<compile_context>
chip_gen: v6e
topology: v6e:2x2x1
jax: 0.10.0
libtpu: 0.0.40
codegen_flags: <defaults>
</compile_context>

<pallas_src>
import jax
import jax.numpy as jnp
import numpy as np
from jax.experimental import pallas as pl
from jax.experimental.pallas import tpu as pltpu

EPS = 1e-5          # PyTorch BatchNorm1d default eps
HALO = 8            # sublane-aligned left halo of the shared padded scratch buffer


# --------------------------------------------------------------------------------- #
# Residual block kernel (conv7/s2 -> BN -> relu -> conv5 -> BN -> relu -> conv3 -> BN
#                        -> +residual -> relu), all in one gridless Pallas call.
# --------------------------------------------------------------------------------- #
def residual_block_kernel(x2_ref, w1_ref, g1_ref, be1_ref,
                          w2_ref, g2_ref, be2_ref,
                          w3_ref, g3_ref, be3_ref,
                          out_ref, pad_ref):
    N, T1, Cout = out_ref.shape
    M = N * T1
    two_cin = x2_ref.shape[-1]           # = 2 * Cin (two time steps packed on lanes)

    def bn(h, g_ref, be_ref):
        # training-mode BatchNorm1d over the (N, L) batch; one pass: sum + sum-of-sq
        inv_m = jnp.float32(1.0 / M)
        mean = jnp.sum(h, axis=0, keepdims=True) * inv_m
        meansq = jnp.sum(h * h, axis=0, keepdims=True) * inv_m
        var = meansq - mean * mean
        return (h - mean) * (jax.lax.rsqrt(var + EPS) * g_ref[...]) + be_ref[...]

    # ---- conv1: kernel=7, stride=2, pad=3 — ONE matmul -------------------------- #
    # x2 packs two consecutive (already zero-padded) time steps per row, so the
    # stride-2 conv becomes 4 unit-stride row slices concatenated along lanes
    # (im2col) and a single (M, 8*Cin) x (8*Cin, Cout) MXU matmul; the 8th tap's
    # weight rows are zero.
    x2 = x2_ref[...]
    xs = jnp.concatenate([x2[:, d:d + T1, :] for d in range(4)], axis=-1)
    acc = jnp.dot(xs.reshape(M, 4 * two_cin), w1_ref[...],
                  preferred_element_type=jnp.float32)
    h1 = jnp.maximum(bn(acc, g1_ref, be1_ref), 0.0)          # this is `inx`

    # shared padded scratch for conv2/conv3: interior written at the sublane-aligned
    # offset HALO; only the halo rows that are actually read as padding are zeroed.
    pad_ref[:, HALO - 2:HALO, :] = jnp.zeros((N, 2, Cout), jnp.float32)
    pad_ref[:, HALO + T1:HALO + T1 + 2, :] = jnp.zeros((N, 2, Cout), jnp.float32)
    pad_ref[:, HALO:HALO + T1, :] = h1.reshape(N, T1, Cout)

    # ---- conv2: kernel=5, stride=1, pad=2 — ONE matmul -------------------------- #
    xs2 = jnp.concatenate(
        [pad_ref[:, HALO - 2 + d:HALO - 2 + d + T1, :] for d in range(5)], axis=-1)
    acc = jnp.dot(xs2.reshape(M, 5 * Cout), w2_ref[...],
                  preferred_element_type=jnp.float32)
    h2 = jnp.maximum(bn(acc, g2_ref, be2_ref), 0.0)

    # ---- conv3: kernel=3, stride=1, pad=1 — ONE matmul, then residual + relu ---- #
    pad_ref[:, HALO:HALO + T1, :] = h2.reshape(N, T1, Cout)   # halo rows still zero
    xs3 = jnp.concatenate(
        [pad_ref[:, HALO - 1 + d:HALO - 1 + d + T1, :] for d in range(3)], axis=-1)
    acc = jnp.dot(xs3.reshape(M, 3 * Cout), w3_ref[...],
                  preferred_element_type=jnp.float32)
    h3 = bn(acc, g3_ref, be3_ref)
    out_ref[...] = jnp.maximum(h3 + h1, 0.0).reshape(N, T1, Cout)


def residual_block_forward_nlc(x_nlc, params):
    # Conv biases b1/b2/b3 are intentionally NOT passed to the kernel: a per-channel
    # bias immediately followed by training-mode BatchNorm (which subtracts the batch
    # mean) cancels exactly, so dropping it is numerically identical.
    (w1, _b1, g1, be1, w2, _b2, g2, be2, w3, _b3, g3, be3) = params
    N, T, Cin = x_nlc.shape
    Cout = w1.shape[0]
    T1 = (T + 2 * 3 - 7) // 2 + 1            # conv1 output length (= (T-1)//2 + 1)
    P = T1 + 3                               # number of packed time-step pairs

    # Single wrapper-side layout op: pad time (3 left, rest right) up to 2*P rows;
    # the following reshape is free on contiguous NLC data and packs consecutive
    # time-step pairs onto the lane axis so conv1's stride-2 taps become unit-stride
    # slices inside the kernel.
    xpad = jnp.pad(x_nlc.astype(jnp.float32), ((0, 0), (3, 2 * P - 3 - T), (0, 0)))
    x2 = xpad.reshape(N, P, 2 * Cin)

    # weights as (K*C, Cout) im2col operands; conv1 padded to 8 taps (8th is zero).
    w1cat = jnp.concatenate(
        [jnp.transpose(w1, (2, 1, 0)), jnp.zeros((1, Cin, Cout), w1.dtype)],
        axis=0).reshape(8 * Cin, Cout).astype(jnp.float32)
    w2cat = jnp.transpose(w2, (2, 1, 0)).reshape(5 * Cout, Cout).astype(jnp.float32)
    w3cat = jnp.transpose(w3, (2, 1, 0)).reshape(3 * Cout, Cout).astype(jnp.float32)
    row = lambda v: v.reshape(1, -1).astype(jnp.float32)

    vmem = pl.BlockSpec(memory_space=pltpu.MemorySpace.VMEM)
    return pl.pallas_call(
        residual_block_kernel,
        out_shape=jax.ShapeDtypeStruct((N, T1, Cout), jnp.float32),
        in_specs=[vmem] * 10,
        out_specs=vmem,
        scratch_shapes=[pltpu.VMEM((N, T1 + HALO + 2, Cout), jnp.float32)],
    )(x2, w1cat, row(g1), row(be1), w2cat, row(g2), row(be2),
      w3cat, row(g3), row(be3))


# --------------------------------------------------------------------------------- #
# fc1 -> fc2 -> fc3 -> softmax head as a second small Pallas kernel.
# --------------------------------------------------------------------------------- #
def mlp_head_kernel(x_ref, w1_ref, b1_ref, w2_ref, b2_ref, w3_ref, b3_ref, out_ref):
    h = jnp.dot(x_ref[...], w1_ref[...], preferred_element_type=jnp.float32) + b1_ref[...]
    h = jnp.dot(h, w2_ref[...], preferred_element_type=jnp.float32) + b2_ref[...]
    z = jnp.dot(h, w3_ref[...], preferred_element_type=jnp.float32) + b3_ref[...]
    z = z - jnp.max(z, axis=-1, keepdims=True)
    e = jnp.exp(z)
    out_ref[...] = e / jnp.sum(e, axis=-1, keepdims=True)


def mlp_head_forward(feat, fw1, fb1, fw2, fb2, fw3, fb3):
    N = feat.shape[0]
    n_classes = fw3.shape[1]
    row = lambda v: v.reshape(1, -1).astype(jnp.float32)
    vmem = pl.BlockSpec(memory_space=pltpu.MemorySpace.VMEM)
    return pl.pallas_call(
        mlp_head_kernel,
        out_shape=jax.ShapeDtypeStruct((N, n_classes), jnp.float32),
        in_specs=[vmem] * 7,
        out_specs=vmem,
    )(feat.astype(jnp.float32), fw1.astype(jnp.float32), row(fb1),
      fw2.astype(jnp.float32), row(fb2), fw3.astype(jnp.float32), row(fb3))


# --------------------------------------------------------------------------------- #
# Full ResNet forward (3 residual blocks + flatten + fc1/fc2/fc3 + softmax).
# --------------------------------------------------------------------------------- #
def resnet_forward(x_ncl, block_params, fc_params):
    x = jnp.transpose(x_ncl, (0, 2, 1)).astype(jnp.float32)   # NCL -> NLC, once
    for params in block_params:
        x = residual_block_forward_nlc(x, params)
    N, T, C = x.shape
    feat = x.reshape(N, T * C)                # lane-dense time-major flatten
    (fw1, fb1, fw2, fb2, fw3, fb3) = fc_params
    # fc1 was defined for PyTorch's channel-major flatten (c*T + t); permute its rows
    # once so we avoid transposing the activation back to NCL.
    fw1p = jnp.transpose(fw1.reshape(C, T, -1), (1, 0, 2)).reshape(T * C, -1)
    return mlp_head_forward(feat, fw1p, fb1, fw2, fb2, fw3, fb3)


# --------------------------------------------------------------------------------- #
# Pure-JAX mirror of the PyTorch module (training-mode BatchNorm) for verification.
# --------------------------------------------------------------------------------- #
def reference_forward(x, block_params, fc_params):
    def conv1d(x, w, b, stride, pad):
        y = jax.lax.conv_general_dilated(
            x, w, window_strides=(stride,), padding=[(pad, pad)],
            dimension_numbers=('NCH', 'OIH', 'NCH'))
        return y + b[None, :, None]

    def bn(x, g, be):
        mean = jnp.mean(x, axis=(0, 2), keepdims=True)
        var = jnp.mean((x - mean) ** 2, axis=(0, 2), keepdims=True)
        return (x - mean) / jnp.sqrt(var + EPS) * g[None, :, None] + be[None, :, None]

    for (w1, b1, g1, be1, w2, b2, g2, be2, w3, b3, g3, be3) in block_params:
        h = jax.nn.relu(bn(conv1d(x, w1, b1, 2, 3), g1, be1))
        inx = h
        h = jax.nn.relu(bn(conv1d(h, w2, b2, 1, 2), g2, be2))
        x = jax.nn.relu(bn(conv1d(h, w3, b3, 1, 1), g3, be3) + inx)

    feat = x.reshape(x.shape[0], -1)          # PyTorch x.view(N, -1): NCL order
    (fw1, fb1, fw2, fb2, fw3, fb3) = fc_params
    h = feat @ fw1 + fb1
    h = h @ fw2 + fb2
    logits = h @ fw3 + fb3
    z = logits - jnp.max(logits, axis=-1, keepdims=True)
    e = jnp.exp(z)
    return e / jnp.sum(e, axis=-1, keepdims=True)


if __name__ == "__main__":
    N, n_in, T = 2, 4, 16                     # batch=2, n_in=4 channels, time_steps=16
    widths = [n_in, 8, 16, 16]                # ResNet channel plan: [n_in, 8, 16, 16]
    key = jax.random.PRNGKey(0)

    def normal(k, shape, scale):
        return scale * jax.random.normal(k, shape, jnp.float32)

    block_params = []
    for cin, cout in zip(widths[:-1], widths[1:]):
        key, *ks = jax.random.split(key, 13)
        block_params.append((
            normal(ks[0], (cout, cin, 7), 0.2),  normal(ks[1], (cout,), 0.1),
            1.0 + normal(ks[2], (cout,), 0.1),   normal(ks[3], (cout,), 0.1),
            normal(ks[4], (cout, cout, 5), 0.2), normal(ks[5], (cout,), 0.1),
            1.0 + normal(ks[6], (cout,), 0.1),   normal(ks[7], (cout,), 0.1),
            normal(ks[8], (cout, cout, 3), 0.2), normal(ks[9], (cout,), 0.1),
            1.0 + normal(ks[10], (cout,), 0.1),  normal(ks[11], (cout,), 0.1),
        ))

    t_out = T
    for _ in widths[1:]:
        t_out = (t_out - 1) // 2 + 1
    feat_dim = widths[-1] * t_out             # lazily-built fc1 input size in PyTorch

    key, kx, k1, k2, k3, k4, k5, k6 = jax.random.split(key, 8)
    x = jax.random.normal(kx, (N, n_in, T), jnp.float32)
    fc_params = (
        normal(k1, (feat_dim, 512), 1.0 / np.sqrt(feat_dim)), normal(k2, (512,), 0.1),
        normal(k3, (512, 64), 1.0 / np.sqrt(512.0)),          normal(k4, (64,), 0.1),
        normal(k5, (64, 2), 1.0 / np.sqrt(64.0)),             normal(k6, (2,), 0.1),
    )

    out = jax.jit(resnet_forward)(x, block_params, fc_params)
    out = jax.block_until_ready(out)

    ref = reference_forward(x, block_params, fc_params)
    np.testing.assert_allclose(np.asarray(out), np.asarray(ref), rtol=2e-3, atol=2e-3)
    print("KERNEL_OK")
</pallas_src>

<mosaic_0001>
module attributes {stable_mosaic.version = 11 : i64} {
  func.func @residual_block_kernel(%arg0: memref<2x11x8xf32, #tpu.memory_space<vmem>>, %arg1: memref<32x8xf32, #tpu.memory_space<vmem>>, %arg2: memref<1x8xf32, #tpu.memory_space<vmem>>, %arg3: memref<1x8xf32, #tpu.memory_space<vmem>>, %arg4: memref<40x8xf32, #tpu.memory_space<vmem>>, %arg5: memref<1x8xf32, #tpu.memory_space<vmem>>, %arg6: memref<1x8xf32, #tpu.memory_space<vmem>>, %arg7: memref<24x8xf32, #tpu.memory_space<vmem>>, %arg8: memref<1x8xf32, #tpu.memory_space<vmem>>, %arg9: memref<1x8xf32, #tpu.memory_space<vmem>>, %arg10: memref<2x8x8xf32, #tpu.memory_space<vmem>>, %arg11: memref<2x18x8xf32, #tpu.memory_space<vmem>>) attributes {dimension_semantics = [], scalar_prefetch = 0 : i64, scratch_operands = 1 : i64, tpu.core_type = #tpu.core_type<tc>} {
    %c0 = arith.constant 0 : index
    %c0_0 = arith.constant 0 : index
    %c0_1 = arith.constant 0 : index
    %0 = vector.load %arg0[%c0, %c0_0, %c0_1] : memref<2x11x8xf32, #tpu.memory_space<vmem>>, vector<2x11x8xf32>
    %1 = vector.extract_strided_slice %0 {offsets = [0, 0, 0], sizes = [2, 8, 8], strides = [1, 1, 1]} : vector<2x11x8xf32> to vector<2x8x8xf32>
    %2 = vector.extract_strided_slice %0 {offsets = [0, 1, 0], sizes = [2, 8, 8], strides = [1, 1, 1]} : vector<2x11x8xf32> to vector<2x8x8xf32>
    %3 = vector.extract_strided_slice %0 {offsets = [0, 2, 0], sizes = [2, 8, 8], strides = [1, 1, 1]} : vector<2x11x8xf32> to vector<2x8x8xf32>
    %4 = vector.extract_strided_slice %0 {offsets = [0, 3, 0], sizes = [2, 8, 8], strides = [1, 1, 1]} : vector<2x11x8xf32> to vector<2x8x8xf32>
    %5 = tpu.concatenate %1, %2, %3, %4 in 2 : vector<2x8x8xf32>, vector<2x8x8xf32>, vector<2x8x8xf32>, vector<2x8x8xf32> -> vector<2x8x32xf32>
    %6 = vector.shape_cast %5 : vector<2x8x32xf32> to vector<16x32xf32>
    %c0_2 = arith.constant 0 : index
    %c0_3 = arith.constant 0 : index
    %7 = vector.load %arg1[%c0_2, %c0_3] : memref<32x8xf32, #tpu.memory_space<vmem>>, vector<32x8xf32>
    %cst = arith.constant dense<0.000000e+00> : vector<16x8xf32>
    %8 = tpu.matmul %6, %7, %cst {dimension_numbers = #tpu.dot_dimension_numbers<[1], [0], [0], [1], [0, 0, 1, 1], [], []>} : vector<16x32xf32>, vector<32x8xf32>, vector<16x8xf32> -> vector<16x8xf32>
    %cst_4 = arith.constant dense<0.000000e+00> : vector<8xf32>
    %9 = vector.multi_reduction <add>, %8, %cst_4 [0] : vector<16x8xf32> to vector<8xf32>
    %10 = vector.shape_cast %9 : vector<8xf32> to vector<1x8xf32>
    %cst_5 = arith.constant 6.250000e-02 : f32
    %11 = vector.broadcast %cst_5 : f32 to vector<1x8xf32>
    %12 = arith.mulf %10, %11 : vector<1x8xf32>
    %13 = arith.mulf %8, %8 : vector<16x8xf32>
    %cst_6 = arith.constant dense<0.000000e+00> : vector<8xf32>
    %14 = vector.multi_reduction <add>, %13, %cst_6 [0] : vector<16x8xf32> to vector<8xf32>
    %15 = vector.shape_cast %14 : vector<8xf32> to vector<1x8xf32>
    %cst_7 = arith.constant 6.250000e-02 : f32
    %16 = vector.broadcast %cst_7 : f32 to vector<1x8xf32>
    %17 = arith.mulf %15, %16 : vector<1x8xf32>
    %18 = arith.mulf %12, %12 : vector<1x8xf32>
    %19 = arith.subf %17, %18 : vector<1x8xf32>
    %20 = vector.broadcast %12 : vector<1x8xf32> to vector<16x8xf32>
    %21 = arith.subf %8, %20 : vector<16x8xf32>
    %cst_8 = arith.constant 9.99999974E-6 : f32
    %22 = vector.broadcast %cst_8 : f32 to vector<1x8xf32>
    %23 = arith.addf %19, %22 : vector<1x8xf32>
    %24 = math.rsqrt %23 : vector<1x8xf32>
    %c0_9 = arith.constant 0 : index
    %c0_10 = arith.constant 0 : index
    %25 = vector.load %arg2[%c0_9, %c0_10] : memref<1x8xf32, #tpu.memory_space<vmem>>, vector<1x8xf32>
    %26 = arith.mulf %24, %25 : vector<1x8xf32>
    %27 = vector.broadcast %26 : vector<1x8xf32> to vector<16x8xf32>
    %28 = arith.mulf %21, %27 : vector<16x8xf32>
    %c0_11 = arith.constant 0 : index
    %c0_12 = arith.constant 0 : index
    %29 = vector.load %arg3[%c0_11, %c0_12] : memref<1x8xf32, #tpu.memory_space<vmem>>, vector<1x8xf32>
    %30 = vector.broadcast %29 : vector<1x8xf32> to vector<16x8xf32>
    %31 = arith.addf %28, %30 : vector<16x8xf32>
    %cst_13 = arith.constant 0.000000e+00 : f32
    %32 = vector.broadcast %cst_13 : f32 to vector<16x8xf32>
    %33 = arith.maximumf %31, %32 : vector<16x8xf32>
    %cst_14 = arith.constant 0.000000e+00 : f32
    %34 = vector.broadcast %cst_14 : f32 to vector<2x2x8xf32>
    %c0_15 = arith.constant 0 : index
    %c6 = arith.constant 6 : index
    %c0_16 = arith.constant 0 : index
    %35 = vector.load %arg11[%c0_15, %c6, %c0_16] : memref<2x18x8xf32, #tpu.memory_space<vmem>>, vector<2x2x8xf32>
    tpu.vector_store %arg11[%c0_15, %c6, %c0_16], %34 {strides = array<i32>} : memref<2x18x8xf32, #tpu.memory_space<vmem>>, vector<2x2x8xf32>,
    %cst_17 = arith.constant 0.000000e+00 : f32
    %36 = vector.broadcast %cst_17 : f32 to vector<2x2x8xf32>
    %c0_18 = arith.constant 0 : index
    %c16 = arith.constant 16 : index
    %c0_19 = arith.constant 0 : index
    %37 = vector.load %arg11[%c0_18, %c16, %c0_19] : memref<2x18x8xf32, #tpu.memory_space<vmem>>, vector<2x2x8xf32>
    tpu.vector_store %arg11[%c0_18, %c16, %c0_19], %36 {strides = array<i32>} : memref<2x18x8xf32, #tpu.memory_space<vmem>>, vector<2x2x8xf32>,
    %38 = vector.shape_cast %33 : vector<16x8xf32> to vector<2x8x8xf32>
    %c0_20 = arith.constant 0 : index
    %c8 = arith.constant 8 : index
    %c0_21 = arith.constant 0 : index
    %39 = vector.load %arg11[%c0_20, %c8, %c0_21] : memref<2x18x8xf32, #tpu.memory_space<vmem>>, vector<2x8x8xf32>
    tpu.vector_store %arg11[%c0_20, %c8, %c0_21], %38 {strides = array<i32>} : memref<2x18x8xf32, #tpu.memory_space<vmem>>, vector<2x8x8xf32>,
    %c0_22 = arith.constant 0 : index
    %c6_23 = arith.constant 6 : index
    %c0_24 = arith.constant 0 : index
    %40 = vector.load %arg11[%c0_22, %c6_23, %c0_24] : memref<2x18x8xf32, #tpu.memory_space<vmem>>, vector<2x8x8xf32>
    %c0_25 = arith.constant 0 : index
    %c7 = arith.constant 7 : index
    %c0_26 = arith.constant 0 : index
    %41 = vector.load %arg11[%c0_25, %c7, %c0_26] : memref<2x18x8xf32, #tpu.memory_space<vmem>>, vector<2x8x8xf32>
    %c0_27 = arith.constant 0 : index
    %c8_28 = arith.constant 8 : index
    %c0_29 = arith.constant 0 : index
    %42 = vector.load %arg11[%c0_27, %c8_28, %c0_29] : memref<2x18x8xf32, #tpu.memory_space<vmem>>, vector<2x8x8xf32>
    %c0_30 = arith.constant 0 : index
    %c9 = arith.constant 9 : index
    %c0_31 = arith.constant 0 : index
    %43 = vector.load %arg11[%c0_30, %c9, %c0_31] : memref<2x18x8xf32, #tpu.memory_space<vmem>>, vector<2x8x8xf32>
    %c0_32 = arith.constant 0 : index
    %c10 = arith.constant 10 : index
    %c0_33 = arith.constant 0 : index
    %44 = vector.load %arg11[%c0_32, %c10, %c0_33] : memref<2x18x8xf32, #tpu.memory_space<vmem>>, vector<2x8x8xf32>
    %45 = tpu.concatenate %40, %41, %42, %43, %44 in 2 : vector<2x8x8xf32>, vector<2x8x8xf32>, vector<2x8x8xf32>, vector<2x8x8xf32>, vector<2x8x8xf32> -> vector<2x8x40xf32>
    %46 = vector.shape_cast %45 : vector<2x8x40xf32> to vector<16x40xf32>
    %c0_34 = arith.constant 0 : index
    %c0_35 = arith.constant 0 : index
    %47 = vector.load %arg4[%c0_34, %c0_35] : memref<40x8xf32, #tpu.memory_space<vmem>>, vector<40x8xf32>
    %cst_36 = arith.constant dense<0.000000e+00> : vector<16x8xf32>
    %48 = tpu.matmul %46, %47, %cst_36 {dimension_numbers = #tpu.dot_dimension_numbers<[1], [0], [0], [1], [0, 0, 1, 1], [], []>} : vector<16x40xf32>, vector<40x8xf32>, vector<16x8xf32> -> vector<16x8xf32>
    %cst_37 = arith.constant dense<0.000000e+00> : vector<8xf32>
    %49 = vector.multi_reduction <add>, %48, %cst_37 [0] : vector<16x8xf32> to vector<8xf32>
    %50 = vector.shape_cast %49 : vector<8xf32> to vector<1x8xf32>
    %cst_38 = arith.constant 6.250000e-02 : f32
    %51 = vector.broadcast %cst_38 : f32 to vector<1x8xf32>
    %52 = arith.mulf %50, %51 : vector<1x8xf32>
    %53 = arith.mulf %48, %48 : vector<16x8xf32>
    %cst_39 = arith.constant dense<0.000000e+00> : vector<8xf32>
    %54 = vector.multi_reduction <add>, %53, %cst_39 [0] : vector<16x8xf32> to vector<8xf32>
    %55 = vector.shape_cast %54 : vector<8xf32> to vector<1x8xf32>
    %cst_40 = arith.constant 6.250000e-02 : f32
    %56 = vector.broadcast %cst_40 : f32 to vector<1x8xf32>
    %57 = arith.mulf %55, %56 : vector<1x8xf32>
    %58 = arith.mulf %52, %52 : vector<1x8xf32>
    %59 = arith.subf %57, %58 : vector<1x8xf32>
    %60 = vector.broadcast %52 : vector<1x8xf32> to vector<16x8xf32>
    %61 = arith.subf %48, %60 : vector<16x8xf32>
    %cst_41 = arith.constant 9.99999974E-6 : f32
    %62 = vector.broadcast %cst_41 : f32 to vector<1x8xf32>
    %63 = arith.addf %59, %62 : vector<1x8xf32>
    %64 = math.rsqrt %63 : vector<1x8xf32>
    %c0_42 = arith.constant 0 : index
    %c0_43 = arith.constant 0 : index
    %65 = vector.load %arg5[%c0_42, %c0_43] : memref<1x8xf32, #tpu.memory_space<vmem>>, vector<1x8xf32>
    %66 = arith.mulf %64, %65 : vector<1x8xf32>
    %67 = vector.broadcast %66 : vector<1x8xf32> to vector<16x8xf32>
    %68 = arith.mulf %61, %67 : vector<16x8xf32>
    %c0_44 = arith.constant 0 : index
    %c0_45 = arith.constant 0 : index
    %69 = vector.load %arg6[%c0_44, %c0_45] : memref<1x8xf32, #tpu.memory_space<vmem>>, vector<1x8xf32>
    %70 = vector.broadcast %69 : vector<1x8xf32> to vector<16x8xf32>
    %71 = arith.addf %68, %70 : vector<16x8xf32>
    %cst_46 = arith.constant 0.000000e+00 : f32
    %72 = vector.broadcast %cst_46 : f32 to vector<16x8xf32>
    %73 = arith.maximumf %71, %72 : vector<16x8xf32>
    %74 = vector.shape_cast %73 : vector<16x8xf32> to vector<2x8x8xf32>
    %c0_47 = arith.constant 0 : index
    %c8_48 = arith.constant 8 : index
    %c0_49 = arith.constant 0 : index
    %75 = vector.load %arg11[%c0_47, %c8_48, %c0_49] : memref<2x18x8xf32, #tpu.memory_space<vmem>>, vector<2x8x8xf32>
    tpu.vector_store %arg11[%c0_47, %c8_48, %c0_49], %74 {strides = array<i32>} : memref<2x18x8xf32, #tpu.memory_space<vmem>>, vector<2x8x8xf32>,
    %c0_50 = arith.constant 0 : index
    %c7_51 = arith.constant 7 : index
    %c0_52 = arith.constant 0 : index
    %76 = vector.load %arg11[%c0_50, %c7_51, %c0_52] : memref<2x18x8xf32, #tpu.memory_space<vmem>>, vector<2x8x8xf32>
    %c0_53 = arith.constant 0 : index
    %c8_54 = arith.constant 8 : index
    %c0_55 = arith.constant 0 : index
    %77 = vector.load %arg11[%c0_53, %c8_54, %c0_55] : memref<2x18x8xf32, #tpu.memory_space<vmem>>, vector<2x8x8xf32>
    %c0_56 = arith.constant 0 : index
    %c9_57 = arith.constant 9 : index
    %c0_58 = arith.constant 0 : index
    %78 = vector.load %arg11[%c0_56, %c9_57, %c0_58] : memref<2x18x8xf32, #tpu.memory_space<vmem>>, vector<2x8x8xf32>
    %79 = tpu.concatenate %76, %77, %78 in 2 : vector<2x8x8xf32>, vector<2x8x8xf32>, vector<2x8x8xf32> -> vector<2x8x24xf32>
    %80 = vector.shape_cast %79 : vector<2x8x24xf32> to vector<16x24xf32>
    %c0_59 = arith.constant 0 : index
    %c0_60 = arith.constant 0 : index
    %81 = vector.load %arg7[%c0_59, %c0_60] : memref<24x8xf32, #tpu.memory_space<vmem>>, vector<24x8xf32>
    %cst_61 = arith.constant dense<0.000000e+00> : vector<16x8xf32>
    %82 = tpu.matmul %80, %81, %cst_61 {dimension_numbers = #tpu.dot_dimension_numbers<[1], [0], [0], [1], [0, 0, 1, 1], [], []>} : vector<16x24xf32>, vector<24x8xf32>, vector<16x8xf32> -> vector<16x8xf32>
    %cst_62 = arith.constant dense<0.000000e+00> : vector<8xf32>
    %83 = vector.multi_reduction <add>, %82, %cst_62 [0] : vector<16x8xf32> to vector<8xf32>
    %84 = vector.shape_cast %83 : vector<8xf32> to vector<1x8xf32>
    %cst_63 = arith.constant 6.250000e-02 : f32
    %85 = vector.broadcast %cst_63 : f32 to vector<1x8xf32>
    %86 = arith.mulf %84, %85 : vector<1x8xf32>
    %87 = arith.mulf %82, %82 : vector<16x8xf32>
    %cst_64 = arith.constant dense<0.000000e+00> : vector<8xf32>
    %88 = vector.multi_reduction <add>, %87, %cst_64 [0] : vector<16x8xf32> to vector<8xf32>
    %89 = vector.shape_cast %88 : vector<8xf32> to vector<1x8xf32>
    %cst_65 = arith.constant 6.250000e-02 : f32
    %90 = vector.broadcast %cst_65 : f32 to vector<1x8xf32>
    %91 = arith.mulf %89, %90 : vector<1x8xf32>
    %92 = arith.mulf %86, %86 : vector<1x8xf32>
    %93 = arith.subf %91, %92 : vector<1x8xf32>
    %94 = vector.broadcast %86 : vector<1x8xf32> to vector<16x8xf32>
    %95 = arith.subf %82, %94 : vector<16x8xf32>
    %cst_66 = arith.constant 9.99999974E-6 : f32
    %96 = vector.broadcast %cst_66 : f32 to vector<1x8xf32>
    %97 = arith.addf %93, %96 : vector<1x8xf32>
    %98 = math.rsqrt %97 : vector<1x8xf32>
    %c0_67 = arith.constant 0 : index
    %c0_68 = arith.constant 0 : index
    %99 = vector.load %arg8[%c0_67, %c0_68] : memref<1x8xf32, #tpu.memory_space<vmem>>, vector<1x8xf32>
    %100 = arith.mulf %98, %99 : vector<1x8xf32>
    %101 = vector.broadcast %100 : vector<1x8xf32> to vector<16x8xf32>
    %102 = arith.mulf %95, %101 : vector<16x8xf32>
    %c0_69 = arith.constant 0 : index
    %c0_70 = arith.constant 0 : index
    %103 = vector.load %arg9[%c0_69, %c0_70] : memref<1x8xf32, #tpu.memory_space<vmem>>, vector<1x8xf32>
    %104 = vector.broadcast %103 : vector<1x8xf32> to vector<16x8xf32>
    %105 = arith.addf %102, %104 : vector<16x8xf32>
    %106 = arith.addf %105, %33 : vector<16x8xf32>
    %cst_71 = arith.constant 0.000000e+00 : f32
    %107 = vector.broadcast %cst_71 : f32 to vector<16x8xf32>
    %108 = arith.maximumf %106, %107 : vector<16x8xf32>
    %109 = vector.shape_cast %108 : vector<16x8xf32> to vector<2x8x8xf32>
    %c0_72 = arith.constant 0 : index
    %c0_73 = arith.constant 0 : index
    %c0_74 = arith.constant 0 : index
    %110 = vector.load %arg10[%c0_72, %c0_73, %c0_74] : memref<2x8x8xf32, #tpu.memory_space<vmem>>, vector<2x8x8xf32>
    tpu.vector_store %arg10[%c0_72, %c0_73, %c0_74], %109 {strides = array<i32>} : memref<2x8x8xf32, #tpu.memory_space<vmem>>, vector<2x8x8xf32>,
    return
  }
}

module attributes {stable_mosaic.version = 11 : i64} {
  func.func @residual_block_kernel(%arg0: memref<2x7x16xf32, #tpu.memory_space<vmem>>, %arg1: memref<64x16xf32, #tpu.memory_space<vmem>>, %arg2: memref<1x16xf32, #tpu.memory_space<vmem>>, %arg3: memref<1x16xf32, #tpu.memory_space<vmem>>, %arg4: memref<80x16xf32, #tpu.memory_space<vmem>>, %arg5: memref<1x16xf32, #tpu.memory_space<vmem>>, %arg6: memref<1x16xf32, #tpu.memory_space<vmem>>, %arg7: memref<48x16xf32, #tpu.memory_space<vmem>>, %arg8: memref<1x16xf32, #tpu.memory_space<vmem>>, %arg9: memref<1x16xf32, #tpu.memory_space<vmem>>, %arg10: memref<2x4x16xf32, #tpu.memory_space<vmem>>, %arg11: memref<2x14x16xf32, #tpu.memory_space<vmem>>) attributes {dimension_semantics = [], scalar_prefetch = 0 : i64, scratch_operands = 1 : i64, tpu.core_type = #tpu.core_type<tc>} {
    %c0 = arith.constant 0 : index
    %c0_0 = arith.constant 0 : index
    %c0_1 = arith.constant 0 : index
    %0 = vector.load %arg0[%c0, %c0_0, %c0_1] : memref<2x7x16xf32, #tpu.memory_space<vmem>>, vector<2x7x16xf32>
    %1 = vector.extract_strided_slice %0 {offsets = [0, 0, 0], sizes = [2, 4, 16], strides = [1, 1, 1]} : vector<2x7x16xf32> to vector<2x4x16xf32>
    %2 = vector.extract_strided_slice %0 {offsets = [0, 1, 0], sizes = [2, 4, 16], strides = [1, 1, 1]} : vector<2x7x16xf32> to vector<2x4x16xf32>
    %3 = vector.extract_strided_slice %0 {offsets = [0, 2, 0], sizes = [2, 4, 16], strides = [1, 1, 1]} : vector<2x7x16xf32> to vector<2x4x16xf32>
    %4 = vector.extract_strided_slice %0 {offsets = [0, 3, 0], sizes = [2, 4, 16], strides = [1, 1, 1]} : vector<2x7x16xf32> to vector<2x4x16xf32>
    %5 = tpu.concatenate %1, %2, %3, %4 in 2 : vector<2x4x16xf32>, vector<2x4x16xf32>, vector<2x4x16xf32>, vector<2x4x16xf32> -> vector<2x4x64xf32>
    %6 = vector.shape_cast %5 : vector<2x4x64xf32> to vector<8x64xf32>
    %c0_2 = arith.constant 0 : index
    %c0_3 = arith.constant 0 : index
    %7 = vector.load %arg1[%c0_2, %c0_3] : memref<64x16xf32, #tpu.memory_space<vmem>>, vector<64x16xf32>
    %cst = arith.constant dense<0.000000e+00> : vector<8x16xf32>
    %8 = tpu.matmul %6, %7, %cst {dimension_numbers = #tpu.dot_dimension_numbers<[1], [0], [0], [1], [0, 0, 1, 1], [], []>} : vector<8x64xf32>, vector<64x16xf32>, vector<8x16xf32> -> vector<8x16xf32>
    %cst_4 = arith.constant dense<0.000000e+00> : vector<16xf32>
    %9 = vector.multi_reduction <add>, %8, %cst_4 [0] : vector<8x16xf32> to vector<16xf32>
    %10 = vector.shape_cast %9 : vector<16xf32> to vector<1x16xf32>
    %cst_5 = arith.constant 1.250000e-01 : f32
    %11 = vector.broadcast %cst_5 : f32 to vector<1x16xf32>
    %12 = arith.mulf %10, %11 : vector<1x16xf32>
    %13 = arith.mulf %8, %8 : vector<8x16xf32>
    %cst_6 = arith.constant dense<0.000000e+00> : vector<16xf32>
    %14 = vector.multi_reduction <add>, %13, %cst_6 [0] : vector<8x16xf32> to vector<16xf32>
    %15 = vector.shape_cast %14 : vector<16xf32> to vector<1x16xf32>
    %cst_7 = arith.constant 1.250000e-01 : f32
    %16 = vector.broadcast %cst_7 : f32 to vector<1x16xf32>
    %17 = arith.mulf %15, %16 : vector<1x16xf32>
    %18 = arith.mulf %12, %12 : vector<1x16xf32>
    %19 = arith.subf %17, %18 : vector<1x16xf32>
    %20 = vector.broadcast %12 : vector<1x16xf32> to vector<8x16xf32>
    %21 = arith.subf %8, %20 : vector<8x16xf32>
    %cst_8 = arith.constant 9.99999974E-6 : f32
    %22 = vector.broadcast %cst_8 : f32 to vector<1x16xf32>
    %23 = arith.addf %19, %22 : vector<1x16xf32>
    %24 = math.rsqrt %23 : vector<1x16xf32>
    %c0_9 = arith.constant 0 : index
    %c0_10 = arith.constant 0 : index
    %25 = vector.load %arg2[%c0_9, %c0_10] : memref<1x16xf32, #tpu.memory_space<vmem>>, vector<1x16xf32>
    %26 = arith.mulf %24, %25 : vector<1x16xf32>
    %27 = vector.broadcast %26 : vector<1x16xf32> to vector<8x16xf32>
    %28 = arith.mulf %21, %27 : vector<8x16xf32>
    %c0_11 = arith.constant 0 : index
    %c0_12 = arith.constant 0 : index
    %29 = vector.load %arg3[%c0_11, %c0_12] : memref<1x16xf32, #tpu.memory_space<vmem>>, vector<1x16xf32>
    %30 = vector.broadcast %29 : vector<1x16xf32> to vector<8x16xf32>
    %31 = arith.addf %28, %30 : vector<8x16xf32>
    %cst_13 = arith.constant 0.000000e+00 : f32
    %32 = vector.broadcast %cst_13 : f32 to vector<8x16xf32>
    %33 = arith.maximumf %31, %32 : vector<8x16xf32>
    %cst_14 = arith.constant 0.000000e+00 : f32
    %34 = vector.broadcast %cst_14 : f32 to vector<2x2x16xf32>
    %c0_15 = arith.constant 0 : index
    %c6 = arith.constant 6 : index
    %c0_16 = arith.constant 0 : index
    %35 = vector.load %arg11[%c0_15, %c6, %c0_16] : memref<2x14x16xf32, #tpu.memory_space<vmem>>, vector<2x2x16xf32>
    tpu.vector_store %arg11[%c0_15, %c6, %c0_16], %34 {strides = array<i32>} : memref<2x14x16xf32, #tpu.memory_space<vmem>>, vector<2x2x16xf32>,
    %cst_17 = arith.constant 0.000000e+00 : f32
    %36 = vector.broadcast %cst_17 : f32 to vector<2x2x16xf32>
    %c0_18 = arith.constant 0 : index
    %c12 = arith.constant 12 : index
    %c0_19 = arith.constant 0 : index
    %37 = vector.load %arg11[%c0_18, %c12, %c0_19] : memref<2x14x16xf32, #tpu.memory_space<vmem>>, vector<2x2x16xf32>
    tpu.vector_store %arg11[%c0_18, %c12, %c0_19], %36 {strides = array<i32>} : memref<2x14x16xf32, #tpu.memory_space<vmem>>, vector<2x2x16xf32>,
    %38 = vector.shape_cast %33 : vector<8x16xf32> to vector<2x4x16xf32>
    %c0_20 = arith.constant 0 : index
    %c8 = arith.constant 8 : index
    %c0_21 = arith.constant 0 : index
    %39 = vector.load %arg11[%c0_20, %c8, %c0_21] : memref<2x14x16xf32, #tpu.memory_space<vmem>>, vector<2x4x16xf32>
    tpu.vector_store %arg11[%c0_20, %c8, %c0_21], %38 {strides = array<i32>} : memref<2x14x16xf32, #tpu.memory_space<vmem>>, vector<2x4x16xf32>,
    %c0_22 = arith.constant 0 : index
    %c6_23 = arith.constant 6 : index
    %c0_24 = arith.constant 0 : index
    %40 = vector.load %arg11[%c0_22, %c6_23, %c0_24] : memref<2x14x16xf32, #tpu.memory_space<vmem>>, vector<2x4x16xf32>
    %c0_25 = arith.constant 0 : index
    %c7 = arith.constant 7 : index
    %c0_26 = arith.constant 0 : index
    %41 = vector.load %arg11[%c0_25, %c7, %c0_26] : memref<2x14x16xf32, #tpu.memory_space<vmem>>, vector<2x4x16xf32>
    %c0_27 = arith.constant 0 : index
    %c8_28 = arith.constant 8 : index
    %c0_29 = arith.constant 0 : index
    %42 = vector.load %arg11[%c0_27, %c8_28, %c0_29] : memref<2x14x16xf32, #tpu.memory_space<vmem>>, vector<2x4x16xf32>
    %c0_30 = arith.constant 0 : index
    %c9 = arith.constant 9 : index
    %c0_31 = arith.constant 0 : index
    %43 = vector.load %arg11[%c0_30, %c9, %c0_31] : memref<2x14x16xf32, #tpu.memory_space<vmem>>, vector<2x4x16xf32>
    %c0_32 = arith.constant 0 : index
    %c10 = arith.constant 10 : index
    %c0_33 = arith.constant 0 : index
    %44 = vector.load %arg11[%c0_32, %c10, %c0_33] : memref<2x14x16xf32, #tpu.memory_space<vmem>>, vector<2x4x16xf32>
    %45 = tpu.concatenate %40, %41, %42, %43, %44 in 2 : vector<2x4x16xf32>, vector<2x4x16xf32>, vector<2x4x16xf32>, vector<2x4x16xf32>, vector<2x4x16xf32> -> vector<2x4x80xf32>
    %46 = vector.shape_cast %45 : vector<2x4x80xf32> to vector<8x80xf32>
    %c0_34 = arith.constant 0 : index
    %c0_35 = arith.constant 0 : index
    %47 = vector.load %arg4[%c0_34, %c0_35] : memref<80x16xf32, #tpu.memory_space<vmem>>, vector<80x16xf32>
    %cst_36 = arith.constant dense<0.000000e+00> : vector<8x16xf32>
    %48 = tpu.matmul %46, %47, %cst_36 {dimension_numbers = #tpu.dot_dimension_numbers<[1], [0], [0], [1], [0, 0, 1, 1], [], []>} : vector<8x80xf32>, vector<80x16xf32>, vector<8x16xf32> -> vector<8x16xf32>
    %cst_37 = arith.constant dense<0.000000e+00> : vector<16xf32>
    %49 = vector.multi_reduction <add>, %48, %cst_37 [0] : vector<8x16xf32> to vector<16xf32>
    %50 = vector.shape_cast %49 : vector<16xf32> to vector<1x16xf32>
    %cst_38 = arith.constant 1.250000e-01 : f32
    %51 = vector.broadcast %cst_38 : f32 to vector<1x16xf32>
    %52 = arith.mulf %50, %51 : vector<1x16xf32>
    %53 = arith.mulf %48, %48 : vector<8x16xf32>
    %cst_39 = arith.constant dense<0.000000e+00> : vector<16xf32>
    %54 = vector.multi_reduction <add>, %53, %cst_39 [0] : vector<8x16xf32> to vector<16xf32>
    %55 = vector.shape_cast %54 : vector<16xf32> to vector<1x16xf32>
    %cst_40 = arith.constant 1.250000e-01 : f32
    %56 = vector.broadcast %cst_40 : f32 to vector<1x16xf32>
    %57 = arith.mulf %55, %56 : vector<1x16xf32>
    %58 = arith.mulf %52, %52 : vector<1x16xf32>
    %59 = arith.subf %57, %58 : vector<1x16xf32>
    %60 = vector.broadcast %52 : vector<1x16xf32> to vector<8x16xf32>
    %61 = arith.subf %48, %60 : vector<8x16xf32>
    %cst_41 = arith.constant 9.99999974E-6 : f32
    %62 = vector.broadcast %cst_41 : f32 to vector<1x16xf32>
    %63 = arith.addf %59, %62 : vector<1x16xf32>
    %64 = math.rsqrt %63 : vector<1x16xf32>
    %c0_42 = arith.constant 0 : index
    %c0_43 = arith.constant 0 : index
    %65 = vector.load %arg5[%c0_42, %c0_43] : memref<1x16xf32, #tpu.memory_space<vmem>>, vector<1x16xf32>
    %66 = arith.mulf %64, %65 : vector<1x16xf32>
    %67 = vector.broadcast %66 : vector<1x16xf32> to vector<8x16xf32>
    %68 = arith.mulf %61, %67 : vector<8x16xf32>
    %c0_44 = arith.constant 0 : index
    %c0_45 = arith.constant 0 : index
    %69 = vector.load %arg6[%c0_44, %c0_45] : memref<1x16xf32, #tpu.memory_space<vmem>>, vector<1x16xf32>
    %70 = vector.broadcast %69 : vector<1x16xf32> to vector<8x16xf32>
    %71 = arith.addf %68, %70 : vector<8x16xf32>
    %cst_46 = arith.constant 0.000000e+00 : f32
    %72 = vector.broadcast %cst_46 : f32 to vector<8x16xf32>
    %73 = arith.maximumf %71, %72 : vector<8x16xf32>
    %74 = vector.shape_cast %73 : vector<8x16xf32> to vector<2x4x16xf32>
    %c0_47 = arith.constant 0 : index
    %c8_48 = arith.constant 8 : index
    %c0_49 = arith.constant 0 : index
    %75 = vector.load %arg11[%c0_47, %c8_48, %c0_49] : memref<2x14x16xf32, #tpu.memory_space<vmem>>, vector<2x4x16xf32>
    tpu.vector_store %arg11[%c0_47, %c8_48, %c0_49], %74 {strides = array<i32>} : memref<2x14x16xf32, #tpu.memory_space<vmem>>, vector<2x4x16xf32>,
    %c0_50 = arith.constant 0 : index
    %c7_51 = arith.constant 7 : index
    %c0_52 = arith.constant 0 : index
    %76 = vector.load %arg11[%c0_50, %c7_51, %c0_52] : memref<2x14x16xf32, #tpu.memory_space<vmem>>, vector<2x4x16xf32>
    %c0_53 = arith.constant 0 : index
    %c8_54 = arith.constant 8 : index
    %c0_55 = arith.constant 0 : index
    %77 = vector.load %arg11[%c0_53, %c8_54, %c0_55] : memref<2x14x16xf32, #tpu.memory_space<vmem>>, vector<2x4x16xf32>
    %c0_56 = arith.constant 0 : index
    %c9_57 = arith.constant 9 : index
    %c0_58 = arith.constant 0 : index
    %78 = vector.load %arg11[%c0_56, %c9_57, %c0_58] : memref<2x14x16xf32, #tpu.memory_space<vmem>>, vector<2x4x16xf32>
    %79 = tpu.concatenate %76, %77, %78 in 2 : vector<2x4x16xf32>, vector<2x4x16xf32>, vector<2x4x16xf32> -> vector<2x4x48xf32>
    %80 = vector.shape_cast %79 : vector<2x4x48xf32> to vector<8x48xf32>
    %c0_59 = arith.constant 0 : index
    %c0_60 = arith.constant 0 : index
    %81 = vector.load %arg7[%c0_59, %c0_60] : memref<48x16xf32, #tpu.memory_space<vmem>>, vector<48x16xf32>
    %cst_61 = arith.constant dense<0.000000e+00> : vector<8x16xf32>
    %82 = tpu.matmul %80, %81, %cst_61 {dimension_numbers = #tpu.dot_dimension_numbers<[1], [0], [0], [1], [0, 0, 1, 1], [], []>} : vector<8x48xf32>, vector<48x16xf32>, vector<8x16xf32> -> vector<8x16xf32>
    %cst_62 = arith.constant dense<0.000000e+00> : vector<16xf32>
    %83 = vector.multi_reduction <add>, %82, %cst_62 [0] : vector<8x16xf32> to vector<16xf32>
    %84 = vector.shape_cast %83 : vector<16xf32> to vector<1x16xf32>
    %cst_63 = arith.constant 1.250000e-01 : f32
    %85 = vector.broadcast %cst_63 : f32 to vector<1x16xf32>
    %86 = arith.mulf %84, %85 : vector<1x16xf32>
    %87 = arith.mulf %82, %82 : vector<8x16xf32>
    %cst_64 = arith.constant dense<0.000000e+00> : vector<16xf32>
    %88 = vector.multi_reduction <add>, %87, %cst_64 [0] : vector<8x16xf32> to vector<16xf32>
    %89 = vector.shape_cast %88 : vector<16xf32> to vector<1x16xf32>
    %cst_65 = arith.constant 1.250000e-01 : f32
    %90 = vector.broadcast %cst_65 : f32 to vector<1x16xf32>
    %91 = arith.mulf %89, %90 : vector<1x16xf32>
    %92 = arith.mulf %86, %86 : vector<1x16xf32>
    %93 = arith.subf %91, %92 : vector<1x16xf32>
    %94 = vector.broadcast %86 : vector<1x16xf32> to vector<8x16xf32>
    %95 = arith.subf %82, %94 : vector<8x16xf32>
    %cst_66 = arith.constant 9.99999974E-6 : f32
    %96 = vector.broadcast %cst_66 : f32 to vector<1x16xf32>
    %97 = arith.addf %93, %96 : vector<1x16xf32>
    %98 = math.rsqrt %97 : vector<1x16xf32>
    %c0_67 = arith.constant 0 : index
    %c0_68 = arith.constant 0 : index
    %99 = vector.load %arg8[%c0_67, %c0_68] : memref<1x16xf32, #tpu.memory_space<vmem>>, vector<1x16xf32>
    %100 = arith.mulf %98, %99 : vector<1x16xf32>
    %101 = vector.broadcast %100 : vector<1x16xf32> to vector<8x16xf32>
    %102 = arith.mulf %95, %101 : vector<8x16xf32>
    %c0_69 = arith.constant 0 : index
    %c0_70 = arith.constant 0 : index
    %103 = vector.load %arg9[%c0_69, %c0_70] : memref<1x16xf32, #tpu.memory_space<vmem>>, vector<1x16xf32>
    %104 = vector.broadcast %103 : vector<1x16xf32> to vector<8x16xf32>
    %105 = arith.addf %102, %104 : vector<8x16xf32>
    %106 = arith.addf %105, %33 : vector<8x16xf32>
    %cst_71 = arith.constant 0.000000e+00 : f32
    %107 = vector.broadcast %cst_71 : f32 to vector<8x16xf32>
    %108 = arith.maximumf %106, %107 : vector<8x16xf32>
    %109 = vector.shape_cast %108 : vector<8x16xf32> to vector<2x4x16xf32>
    %c0_72 = arith.constant 0 : index
    %c0_73 = arith.constant 0 : index
    %c0_74 = arith.constant 0 : index
    %110 = vector.load %arg10[%c0_72, %c0_73, %c0_74] : memref<2x4x16xf32, #tpu.memory_space<vmem>>, vector<2x4x16xf32>
    tpu.vector_store %arg10[%c0_72, %c0_73, %c0_74], %109 {strides = array<i32>} : memref<2x4x16xf32, #tpu.memory_space<vmem>>, vector<2x4x16xf32>,
    return
  }
}

module attributes {stable_mosaic.version = 11 : i64} {
  func.func @residual_block_kernel(%arg0: memref<2x5x32xf32, #tpu.memory_space<vmem>>, %arg1: memref<128x16xf32, #tpu.memory_space<vmem>>, %arg2: memref<1x16xf32, #tpu.memory_space<vmem>>, %arg3: memref<1x16xf32, #tpu.memory_space<vmem>>, %arg4: memref<80x16xf32, #tpu.memory_space<vmem>>, %arg5: memref<1x16xf32, #tpu.memory_space<vmem>>, %arg6: memref<1x16xf32, #tpu.memory_space<vmem>>, %arg7: memref<48x16xf32, #tpu.memory_space<vmem>>, %arg8: memref<1x16xf32, #tpu.memory_space<vmem>>, %arg9: memref<1x16xf32, #tpu.memory_space<vmem>>, %arg10: memref<2x2x16xf32, #tpu.memory_space<vmem>>, %arg11: memref<2x12x16xf32, #tpu.memory_space<vmem>>) attributes {dimension_semantics = [], scalar_prefetch = 0 : i64, scratch_operands = 1 : i64, tpu.core_type = #tpu.core_type<tc>} {
    %c0 = arith.constant 0 : index
    %c0_0 = arith.constant 0 : index
    %c0_1 = arith.constant 0 : index
    %0 = vector.load %arg0[%c0, %c0_0, %c0_1] : memref<2x5x32xf32, #tpu.memory_space<vmem>>, vector<2x5x32xf32>
    %1 = vector.extract_strided_slice %0 {offsets = [0, 0, 0], sizes = [2, 2, 32], strides = [1, 1, 1]} : vector<2x5x32xf32> to vector<2x2x32xf32>
    %2 = vector.extract_strided_slice %0 {offsets = [0, 1, 0], sizes = [2, 2, 32], strides = [1, 1, 1]} : vector<2x5x32xf32> to vector<2x2x32xf32>
    %3 = vector.extract_strided_slice %0 {offsets = [0, 2, 0], sizes = [2, 2, 32], strides = [1, 1, 1]} : vector<2x5x32xf32> to vector<2x2x32xf32>
    %4 = vector.extract_strided_slice %0 {offsets = [0, 3, 0], sizes = [2, 2, 32], strides = [1, 1, 1]} : vector<2x5x32xf32> to vector<2x2x32xf32>
    %5 = tpu.concatenate %1, %2, %3, %4 in 2 : vector<2x2x32xf32>, vector<2x2x32xf32>, vector<2x2x32xf32>, vector<2x2x32xf32> -> vector<2x2x128xf32>
    %6 = vector.shape_cast %5 : vector<2x2x128xf32> to vector<4x128xf32>
    %c0_2 = arith.constant 0 : index
    %c0_3 = arith.constant 0 : index
    %7 = vector.load %arg1[%c0_2, %c0_3] : memref<128x16xf32, #tpu.memory_space<vmem>>, vector<128x16xf32>
    %cst = arith.constant dense<0.000000e+00> : vector<4x16xf32>
    %8 = tpu.matmul %6, %7, %cst {dimension_numbers = #tpu.dot_dimension_numbers<[1], [0], [0], [1], [0, 0, 1, 1], [], []>} : vector<4x128xf32>, vector<128x16xf32>, vector<4x16xf32> -> vector<4x16xf32>
    %cst_4 = arith.constant dense<0.000000e+00> : vector<16xf32>
    %9 = vector.multi_reduction <add>, %8, %cst_4 [0] : vector<4x16xf32> to vector<16xf32>
    %10 = vector.shape_cast %9 : vector<16xf32> to vector<1x16xf32>
    %cst_5 = arith.constant 2.500000e-01 : f32
    %11 = vector.broadcast %cst_5 : f32 to vector<1x16xf32>
    %12 = arith.mulf %10, %11 : vector<1x16xf32>
    %13 = arith.mulf %8, %8 : vector<4x16xf32>
    %cst_6 = arith.constant dense<0.000000e+00> : vector<16xf32>
    %14 = vector.multi_reduction <add>, %13, %cst_6 [0] : vector<4x16xf32> to vector<16xf32>
    %15 = vector.shape_cast %14 : vector<16xf32> to vector<1x16xf32>
    %cst_7 = arith.constant 2.500000e-01 : f32
    %16 = vector.broadcast %cst_7 : f32 to vector<1x16xf32>
    %17 = arith.mulf %15, %16 : vector<1x16xf32>
    %18 = arith.mulf %12, %12 : vector<1x16xf32>
    %19 = arith.subf %17, %18 : vector<1x16xf32>
    %20 = vector.broadcast %12 : vector<1x16xf32> to vector<4x16xf32>
    %21 = arith.subf %8, %20 : vector<4x16xf32>
    %cst_8 = arith.constant 9.99999974E-6 : f32
    %22 = vector.broadcast %cst_8 : f32 to vector<1x16xf32>
    %23 = arith.addf %19, %22 : vector<1x16xf32>
    %24 = math.rsqrt %23 : vector<1x16xf32>
    %c0_9 = arith.constant 0 : index
    %c0_10 = arith.constant 0 : index
    %25 = vector.load %arg2[%c0_9, %c0_10] : memref<1x16xf32, #tpu.memory_space<vmem>>, vector<1x16xf32>
    %26 = arith.mulf %24, %25 : vector<1x16xf32>
    %27 = vector.broadcast %26 : vector<1x16xf32> to vector<4x16xf32>
    %28 = arith.mulf %21, %27 : vector<4x16xf32>
    %c0_11 = arith.constant 0 : index
    %c0_12 = arith.constant 0 : index
    %29 = vector.load %arg3[%c0_11, %c0_12] : memref<1x16xf32, #tpu.memory_space<vmem>>, vector<1x16xf32>
    %30 = vector.broadcast %29 : vector<1x16xf32> to vector<4x16xf32>
    %31 = arith.addf %28, %30 : vector<4x16xf32>
    %cst_13 = arith.constant 0.000000e+00 : f32
    %32 = vector.broadcast %cst_13 : f32 to vector<4x16xf32>
    %33 = arith.maximumf %31, %32 : vector<4x16xf32>
    %cst_14 = arith.constant 0.000000e+00 : f32
    %34 = vector.broadcast %cst_14 : f32 to vector<2x2x16xf32>
    %c0_15 = arith.constant 0 : index
    %c6 = arith.constant 6 : index
    %c0_16 = arith.constant 0 : index
    %35 = vector.load %arg11[%c0_15, %c6, %c0_16] : memref<2x12x16xf32, #tpu.memory_space<vmem>>, vector<2x2x16xf32>
    tpu.vector_store %arg11[%c0_15, %c6, %c0_16], %34 {strides = array<i32>} : memref<2x12x16xf32, #tpu.memory_space<vmem>>, vector<2x2x16xf32>,
    %cst_17 = arith.constant 0.000000e+00 : f32
    %36 = vector.broadcast %cst_17 : f32 to vector<2x2x16xf32>
    %c0_18 = arith.constant 0 : index
    %c10 = arith.constant 10 : index
    %c0_19 = arith.constant 0 : index
    %37 = vector.load %arg11[%c0_18, %c10, %c0_19] : memref<2x12x16xf32, #tpu.memory_space<vmem>>, vector<2x2x16xf32>
    tpu.vector_store %arg11[%c0_18, %c10, %c0_19], %36 {strides = array<i32>} : memref<2x12x16xf32, #tpu.memory_space<vmem>>, vector<2x2x16xf32>,
    %38 = vector.shape_cast %33 : vector<4x16xf32> to vector<2x2x16xf32>
    %c0_20 = arith.constant 0 : index
    %c8 = arith.constant 8 : index
    %c0_21 = arith.constant 0 : index
    %39 = vector.load %arg11[%c0_20, %c8, %c0_21] : memref<2x12x16xf32, #tpu.memory_space<vmem>>, vector<2x2x16xf32>
    tpu.vector_store %arg11[%c0_20, %c8, %c0_21], %38 {strides = array<i32>} : memref<2x12x16xf32, #tpu.memory_space<vmem>>, vector<2x2x16xf32>,
    %c0_22 = arith.constant 0 : index
    %c6_23 = arith.constant 6 : index
    %c0_24 = arith.constant 0 : index
    %40 = vector.load %arg11[%c0_22, %c6_23, %c0_24] : memref<2x12x16xf32, #tpu.memory_space<vmem>>, vector<2x2x16xf32>
    %c0_25 = arith.constant 0 : index
    %c7 = arith.constant 7 : index
    %c0_26 = arith.constant 0 : index
    %41 = vector.load %arg11[%c0_25, %c7, %c0_26] : memref<2x12x16xf32, #tpu.memory_space<vmem>>, vector<2x2x16xf32>
    %c0_27 = arith.constant 0 : index
    %c8_28 = arith.constant 8 : index
    %c0_29 = arith.constant 0 : index
    %42 = vector.load %arg11[%c0_27, %c8_28, %c0_29] : memref<2x12x16xf32, #tpu.memory_space<vmem>>, vector<2x2x16xf32>
    %c0_30 = arith.constant 0 : index
    %c9 = arith.constant 9 : index
    %c0_31 = arith.constant 0 : index
    %43 = vector.load %arg11[%c0_30, %c9, %c0_31] : memref<2x12x16xf32, #tpu.memory_space<vmem>>, vector<2x2x16xf32>
    %c0_32 = arith.constant 0 : index
    %c10_33 = arith.constant 10 : index
    %c0_34 = arith.constant 0 : index
    %44 = vector.load %arg11[%c0_32, %c10_33, %c0_34] : memref<2x12x16xf32, #tpu.memory_space<vmem>>, vector<2x2x16xf32>
    %45 = tpu.concatenate %40, %41, %42, %43, %44 in 2 : vector<2x2x16xf32>, vector<2x2x16xf32>, vector<2x2x16xf32>, vector<2x2x16xf32>, vector<2x2x16xf32> -> vector<2x2x80xf32>
    %46 = vector.shape_cast %45 : vector<2x2x80xf32> to vector<4x80xf32>
    %c0_35 = arith.constant 0 : index
    %c0_36 = arith.constant 0 : index
    %47 = vector.load %arg4[%c0_35, %c0_36] : memref<80x16xf32, #tpu.memory_space<vmem>>, vector<80x16xf32>
    %cst_37 = arith.constant dense<0.000000e+00> : vector<4x16xf32>
    %48 = tpu.matmul %46, %47, %cst_37 {dimension_numbers = #tpu.dot_dimension_numbers<[1], [0], [0], [1], [0, 0, 1, 1], [], []>} : vector<4x80xf32>, vector<80x16xf32>, vector<4x16xf32> -> vector<4x16xf32>
    %cst_38 = arith.constant dense<0.000000e+00> : vector<16xf32>
    %49 = vector.multi_reduction <add>, %48, %cst_38 [0] : vector<4x16xf32> to vector<16xf32>
    %50 = vector.shape_cast %49 : vector<16xf32> to vector<1x16xf32>
    %cst_39 = arith.constant 2.500000e-01 : f32
    %51 = vector.broadcast %cst_39 : f32 to vector<1x16xf32>
    %52 = arith.mulf %50, %51 : vector<1x16xf32>
    %53 = arith.mulf %48, %48 : vector<4x16xf32>
    %cst_40 = arith.constant dense<0.000000e+00> : vector<16xf32>
    %54 = vector.multi_reduction <add>, %53, %cst_40 [0] : vector<4x16xf32> to vector<16xf32>
    %55 = vector.shape_cast %54 : vector<16xf32> to vector<1x16xf32>
    %cst_41 = arith.constant 2.500000e-01 : f32
    %56 = vector.broadcast %cst_41 : f32 to vector<1x16xf32>
    %57 = arith.mulf %55, %56 : vector<1x16xf32>
    %58 = arith.mulf %52, %52 : vector<1x16xf32>
    %59 = arith.subf %57, %58 : vector<1x16xf32>
    %60 = vector.broadcast %52 : vector<1x16xf32> to vector<4x16xf32>
    %61 = arith.subf %48, %60 : vector<4x16xf32>
    %cst_42 = arith.constant 9.99999974E-6 : f32
    %62 = vector.broadcast %cst_42 : f32 to vector<1x16xf32>
    %63 = arith.addf %59, %62 : vector<1x16xf32>
    %64 = math.rsqrt %63 : vector<1x16xf32>
    %c0_43 = arith.constant 0 : index
    %c0_44 = arith.constant 0 : index
    %65 = vector.load %arg5[%c0_43, %c0_44] : memref<1x16xf32, #tpu.memory_space<vmem>>, vector<1x16xf32>
    %66 = arith.mulf %64, %65 : vector<1x16xf32>
    %67 = vector.broadcast %66 : vector<1x16xf32> to vector<4x16xf32>
    %68 = arith.mulf %61, %67 : vector<4x16xf32>
    %c0_45 = arith.constant 0 : index
    %c0_46 = arith.constant 0 : index
    %69 = vector.load %arg6[%c0_45, %c0_46] : memref<1x16xf32, #tpu.memory_space<vmem>>, vector<1x16xf32>
    %70 = vector.broadcast %69 : vector<1x16xf32> to vector<4x16xf32>
    %71 = arith.addf %68, %70 : vector<4x16xf32>
    %cst_47 = arith.constant 0.000000e+00 : f32
    %72 = vector.broadcast %cst_47 : f32 to vector<4x16xf32>
    %73 = arith.maximumf %71, %72 : vector<4x16xf32>
    %74 = vector.shape_cast %73 : vector<4x16xf32> to vector<2x2x16xf32>
    %c0_48 = arith.constant 0 : index
    %c8_49 = arith.constant 8 : index
    %c0_50 = arith.constant 0 : index
    %75 = vector.load %arg11[%c0_48, %c8_49, %c0_50] : memref<2x12x16xf32, #tpu.memory_space<vmem>>, vector<2x2x16xf32>
    tpu.vector_store %arg11[%c0_48, %c8_49, %c0_50], %74 {strides = array<i32>} : memref<2x12x16xf32, #tpu.memory_space<vmem>>, vector<2x2x16xf32>,
    %c0_51 = arith.constant 0 : index
    %c7_52 = arith.constant 7 : index
    %c0_53 = arith.constant 0 : index
    %76 = vector.load %arg11[%c0_51, %c7_52, %c0_53] : memref<2x12x16xf32, #tpu.memory_space<vmem>>, vector<2x2x16xf32>
    %c0_54 = arith.constant 0 : index
    %c8_55 = arith.constant 8 : index
    %c0_56 = arith.constant 0 : index
    %77 = vector.load %arg11[%c0_54, %c8_55, %c0_56] : memref<2x12x16xf32, #tpu.memory_space<vmem>>, vector<2x2x16xf32>
    %c0_57 = arith.constant 0 : index
    %c9_58 = arith.constant 9 : index
    %c0_59 = arith.constant 0 : index
    %78 = vector.load %arg11[%c0_57, %c9_58, %c0_59] : memref<2x12x16xf32, #tpu.memory_space<vmem>>, vector<2x2x16xf32>
    %79 = tpu.concatenate %76, %77, %78 in 2 : vector<2x2x16xf32>, vector<2x2x16xf32>, vector<2x2x16xf32> -> vector<2x2x48xf32>
    %80 = vector.shape_cast %79 : vector<2x2x48xf32> to vector<4x48xf32>
    %c0_60 = arith.constant 0 : index
    %c0_61 = arith.constant 0 : index
    %81 = vector.load %arg7[%c0_60, %c0_61] : memref<48x16xf32, #tpu.memory_space<vmem>>, vector<48x16xf32>
    %cst_62 = arith.constant dense<0.000000e+00> : vector<4x16xf32>
    %82 = tpu.matmul %80, %81, %cst_62 {dimension_numbers = #tpu.dot_dimension_numbers<[1], [0], [0], [1], [0, 0, 1, 1], [], []>} : vector<4x48xf32>, vector<48x16xf32>, vector<4x16xf32> -> vector<4x16xf32>
    %cst_63 = arith.constant dense<0.000000e+00> : vector<16xf32>
    %83 = vector.multi_reduction <add>, %82, %cst_63 [0] : vector<4x16xf32> to vector<16xf32>
    %84 = vector.shape_cast %83 : vector<16xf32> to vector<1x16xf32>
    %cst_64 = arith.constant 2.500000e-01 : f32
    %85 = vector.broadcast %cst_64 : f32 to vector<1x16xf32>
    %86 = arith.mulf %84, %85 : vector<1x16xf32>
    %87 = arith.mulf %82, %82 : vector<4x16xf32>
    %cst_65 = arith.constant dense<0.000000e+00> : vector<16xf32>
    %88 = vector.multi_reduction <add>, %87, %cst_65 [0] : vector<4x16xf32> to vector<16xf32>
    %89 = vector.shape_cast %88 : vector<16xf32> to vector<1x16xf32>
    %cst_66 = arith.constant 2.500000e-01 : f32
    %90 = vector.broadcast %cst_66 : f32 to vector<1x16xf32>
    %91 = arith.mulf %89, %90 : vector<1x16xf32>
    %92 = arith.mulf %86, %86 : vector<1x16xf32>
    %93 = arith.subf %91, %92 : vector<1x16xf32>
    %94 = vector.broadcast %86 : vector<1x16xf32> to vector<4x16xf32>
    %95 = arith.subf %82, %94 : vector<4x16xf32>
    %cst_67 = arith.constant 9.99999974E-6 : f32
    %96 = vector.broadcast %cst_67 : f32 to vector<1x16xf32>
    %97 = arith.addf %93, %96 : vector<1x16xf32>
    %98 = math.rsqrt %97 : vector<1x16xf32>
    %c0_68 = arith.constant 0 : index
    %c0_69 = arith.constant 0 : index
    %99 = vector.load %arg8[%c0_68, %c0_69] : memref<1x16xf32, #tpu.memory_space<vmem>>, vector<1x16xf32>
    %100 = arith.mulf %98, %99 : vector<1x16xf32>
    %101 = vector.broadcast %100 : vector<1x16xf32> to vector<4x16xf32>
    %102 = arith.mulf %95, %101 : vector<4x16xf32>
    %c0_70 = arith.constant 0 : index
    %c0_71 = arith.constant 0 : index
    %103 = vector.load %arg9[%c0_70, %c0_71] : memref<1x16xf32, #tpu.memory_space<vmem>>, vector<1x16xf32>
    %104 = vector.broadcast %103 : vector<1x16xf32> to vector<4x16xf32>
    %105 = arith.addf %102, %104 : vector<4x16xf32>
    %106 = arith.addf %105, %33 : vector<4x16xf32>
    %cst_72 = arith.constant 0.000000e+00 : f32
    %107 = vector.broadcast %cst_72 : f32 to vector<4x16xf32>
    %108 = arith.maximumf %106, %107 : vector<4x16xf32>
    %109 = vector.shape_cast %108 : vector<4x16xf32> to vector<2x2x16xf32>
    %c0_73 = arith.constant 0 : index
    %c0_74 = arith.constant 0 : index
    %c0_75 = arith.constant 0 : index
    %110 = vector.load %arg10[%c0_73, %c0_74, %c0_75] : memref<2x2x16xf32, #tpu.memory_space<vmem>>, vector<2x2x16xf32>
    tpu.vector_store %arg10[%c0_73, %c0_74, %c0_75], %109 {strides = array<i32>} : memref<2x2x16xf32, #tpu.memory_space<vmem>>, vector<2x2x16xf32>,
    return
  }
}

module attributes {stable_mosaic.version = 11 : i64} {
  func.func @mlp_head_kernel(%arg0: memref<2x32xf32, #tpu.memory_space<vmem>>, %arg1: memref<32x512xf32, #tpu.memory_space<vmem>>, %arg2: memref<1x512xf32, #tpu.memory_space<vmem>>, %arg3: memref<512x64xf32, #tpu.memory_space<vmem>>, %arg4: memref<1x64xf32, #tpu.memory_space<vmem>>, %arg5: memref<64x2xf32, #tpu.memory_space<vmem>>, %arg6: memref<1x2xf32, #tpu.memory_space<vmem>>, %arg7: memref<2x2xf32, #tpu.memory_space<vmem>>) attributes {dimension_semantics = [], scalar_prefetch = 0 : i64, scratch_operands = 0 : i64, tpu.core_type = #tpu.core_type<tc>} {
    %c0 = arith.constant 0 : index
    %c0_0 = arith.constant 0 : index
    %0 = vector.load %arg0[%c0, %c0_0] : memref<2x32xf32, #tpu.memory_space<vmem>>, vector<2x32xf32>
    %c0_1 = arith.constant 0 : index
    %c0_2 = arith.constant 0 : index
    %1 = vector.load %arg1[%c0_1, %c0_2] : memref<32x512xf32, #tpu.memory_space<vmem>>, vector<32x512xf32>
    %cst = arith.constant dense<0.000000e+00> : vector<2x512xf32>
    %2 = tpu.matmul %0, %1, %cst {dimension_numbers = #tpu.dot_dimension_numbers<[1], [0], [0], [1], [0, 0, 1, 1], [], []>} : vector<2x32xf32>, vector<32x512xf32>, vector<2x512xf32> -> vector<2x512xf32>
    %c0_3 = arith.constant 0 : index
    %c0_4 = arith.constant 0 : index
    %3 = vector.load %arg2[%c0_3, %c0_4] : memref<1x512xf32, #tpu.memory_space<vmem>>, vector<1x512xf32>
    %4 = vector.broadcast %3 : vector<1x512xf32> to vector<2x512xf32>
    %5 = arith.addf %2, %4 : vector<2x512xf32>
    %c0_5 = arith.constant 0 : index
    %c0_6 = arith.constant 0 : index
    %6 = vector.load %arg3[%c0_5, %c0_6] : memref<512x64xf32, #tpu.memory_space<vmem>>, vector<512x64xf32>
    %cst_7 = arith.constant dense<0.000000e+00> : vector<2x64xf32>
    %7 = tpu.matmul %5, %6, %cst_7 {dimension_numbers = #tpu.dot_dimension_numbers<[1], [0], [0], [1], [0, 0, 1, 1], [], []>} : vector<2x512xf32>, vector<512x64xf32>, vector<2x64xf32> -> vector<2x64xf32>
    %c0_8 = arith.constant 0 : index
    %c0_9 = arith.constant 0 : index
    %8 = vector.load %arg4[%c0_8, %c0_9] : memref<1x64xf32, #tpu.memory_space<vmem>>, vector<1x64xf32>
    %9 = vector.broadcast %8 : vector<1x64xf32> to vector<2x64xf32>
    %10 = arith.addf %7, %9 : vector<2x64xf32>
    %c0_10 = arith.constant 0 : index
    %c0_11 = arith.constant 0 : index
    %11 = vector.load %arg5[%c0_10, %c0_11] : memref<64x2xf32, #tpu.memory_space<vmem>>, vector<64x2xf32>
    %cst_12 = arith.constant dense<0.000000e+00> : vector<2x2xf32>
    %12 = tpu.matmul %10, %11, %cst_12 {dimension_numbers = #tpu.dot_dimension_numbers<[1], [0], [0], [1], [0, 0, 1, 1], [], []>} : vector<2x64xf32>, vector<64x2xf32>, vector<2x2xf32> -> vector<2x2xf32>
    %c0_13 = arith.constant 0 : index
    %c0_14 = arith.constant 0 : index
    %13 = vector.load %arg6[%c0_13, %c0_14] : memref<1x2xf32, #tpu.memory_space<vmem>>, vector<1x2xf32>
    %14 = vector.broadcast %13 : vector<1x2xf32> to vector<2x2xf32>
    %15 = arith.addf %12, %14 : vector<2x2xf32>
    %cst_15 = arith.constant dense<0xFF800000> : vector<2xf32>
    %16 = vector.multi_reduction <maximumf>, %15, %cst_15 [1] : vector<2x2xf32> to vector<2xf32>
    %17 = vector.shape_cast %16 : vector<2xf32> to vector<2x1xf32>
    %18 = vector.broadcast %17 : vector<2x1xf32> to vector<2x2xf32>
    %19 = arith.subf %15, %18 : vector<2x2xf32>
    %20 = math.exp %19 : vector<2x2xf32>
    %cst_16 = arith.constant dense<0.000000e+00> : vector<2xf32>
    %21 = vector.multi_reduction <add>, %20, %cst_16 [1] : vector<2x2xf32> to vector<2xf32>
    %22 = vector.shape_cast %21 : vector<2xf32> to vector<2x1xf32>
    %23 = vector.broadcast %22 : vector<2x1xf32> to vector<2x2xf32>
    %24 = arith.divf %20, %23 : vector<2x2xf32>
    %c0_17 = arith.constant 0 : index
    %c0_18 = arith.constant 0 : index
    %25 = vector.load %arg7[%c0_17, %c0_18] : memref<2x2xf32, #tpu.memory_space<vmem>>, vector<2x2xf32>
    tpu.vector_store %arg7[%c0_17, %c0_18], %24 {strides = array<i32>} : memref<2x2xf32, #tpu.memory_space<vmem>>, vector<2x2xf32>,
    return
  }
}

</mosaic_0001>

<bundles_post_ra>
// kernel: resnet_forward.6
= control target key start
LH: loop header
LB: loop body
LE: loop exit
PB: predicated region body
PF: predicated region fallthrough
CT: control target
= control target key end

     0   :  { %v719_v2 = vmov 0.0   ;;  %s721_s21 = smov 32   ;;  %vm722_vm0 = vmmov 0   ;;  %s723_s28 = smov 96   ;;  %v724_v27 = vmov 1983009808   ;;  %v94_v29 = vlaneseq  ;;  %s1029_s0 = inlined_call_operand.vmem [shape: f32[2,5,32], index: 0, kind: input, shape index: {}]   ;;  %s1030_s1 = inlined_call_operand.vmem [shape: f32[128,16], index: 1, kind: input, shape index: {}]   ;;  %s1031_s2 = inlined_call_operand.vmem [shape: f32[1,16], index: 2, kind: input, shape index: {}]   ;;  %s1032_s3 = inlined_call_operand.vmem [shape: f32[1,16], index: 3, kind: input, shape index: {}]   ;;  %s1033_s4 = inlined_call_operand.vmem [shape: f32[80,16], index: 4, kind: input, shape index: {}]   ;;  %s1034_s5 = inlined_call_operand.vmem [shape: f32[1,16], index: 5, kind: input, shape index: {}]   ;;  %s1035_s6 = inlined_call_operand.vmem [shape: f32[1,16], index: 6, kind: input, shape index: {}]   ;;  %s1036_s7 = inlined_call_operand.vmem [shape: f32[48,16], index: 7, kind: input, shape index: {}]   ;;  %s1037_s8 = inlined_call_operand.vmem [shape: f32[1,16], index: 8, kind: input, shape index: {}]   ;;  %s1038_s9 = inlined_call_operand.vmem [shape: f32[1,16], index: 9, kind: input, shape index: {}]   ;;  %s1039_s10 = inlined_call_operand.vmem [shape: f32[2,2,16], index: 10, kind: output, shape index: {}]  }
   0x1   :  { %v785_v0 = vld [vmem:[%s1029_s0] sm:$0x1f]  ;;  %v790_v1 = vld [vmem:[%s1029_s0 + $0x8] sm:$0x1f]  ;;  %632 = vmatprep.subr.mxu0 %v719_v2  ;;  %v87_v3 = vld [vmem:[%s1030_s1 + $0x78] sm:$0xff]  ;;  %667 = vmatprep.subr.mxu1 %v719_v2  ;;  %s720_s0 = smov 64   ;;  %v92_v28 = vunpack.c.l.s4 %v724_v27 }
   0x2   :  { %v47_v4 = vrot.slane %v785_v0, 2  ;;  %v39_v5 = vrot.slane %v785_v0, 1  ;;  %633 = vmatpush3.msra.mxu0 %v87_v3  ;;  %v86_v6 = vld [vmem:[%s1030_s1 + $0x70] sm:$0xff]  ;;  %v48_v7 = vrot.slane %v790_v1, 2  ;;  %v40_v8 = vrot.slane %v790_v1, 1  ;;  %v85_v9 = vld [vmem:[%s1030_s1 + $0x68] sm:$0xff]  ;;  %664 = vmatprep.mubr.msk.f32.mxu0 %vm722_vm0, %v719_v2 }
   0x3   :  { %634 = vmatprep.subr.mxu0 %v719_v2  ;;  %687 = vmatprep.mubr.msk.f32.mxu1 %vm722_vm0, %v719_v2  ;;  %v84_v10 = vld [vmem:[%s1030_s1 + $0x60] sm:$0xff]  ;;  %v56_v11 = vrot.slane %v790_v1, 3  ;;  %v55_v12 = vrot.slane %v785_v0, 3  ;;  %v83_v13 = vld [vmem:[%s1030_s1 + $0x58] sm:$0xff]  ;;  %v82_v14 = vld [vmem:[%s1030_s1 + $0x50] sm:$0xff]  ;;  %vm63_vm1 = vcmask 261120   ;;  %v93_v32 = vunpack.c.0.s8 %v92_v28 }
   0x4   :  { %49 = vrot.lane.b32.xlu1 %v47_v4, %s720_s0  ;;  %41 = vrot.lane.b32.xlu0 %v39_v5, %s721_s21  ;;  %v81_v15 = vld [vmem:[%s1030_s1 + $0x48] sm:$0xff]  ;;  %v80_v16 = vld [vmem:[%s1030_s1 + $0x40] sm:$0xff]  ;;  %v95_v33 = vshrl.u32 %v94_v29, 7  ;;  %vm66_vm2 = vcmask 523264   ;;  %vm69_vm3 = vcmask 785408   ;;  %vm208_vm4 = vcmask 123904  }
   0x5   :  { %635 = vmatpush3.msra.mxu0 %v86_v6  ;;  %v79_v17 = vld [vmem:[%s1030_s1 + $0x38] sm:$0xff]  ;;  %v78_v18 = vld [vmem:[%s1030_s1 + $0x30] sm:$0xff]  ;;  %v77_v19 = vld [vmem:[%s1030_s1 + $0x28] sm:$0xff]  ;;  %209 = vst.msk [vmem:[#allocation2 + $0x6] sm:$0x3] %vm208_vm4, %v719_v2  ;;  %vm169_vm5 = vcmask 125952  }
   0x6   :  { %636 = vmatprep.subr.mxu0 %v719_v2  ;;  %v76_v20 = vld [vmem:[%s1030_s1 + $0x20] sm:$0xff]  ;;  %v75_v21 = vld [vmem:[%s1030_s1 + $0x18] sm:$0xff]  ;;  %v74_v22 = vld [vmem:[%s1030_s1 + $0x10] sm:$0xff]  ;;  %v877_v40 = vsub.s32 %v93_v32, %v95_v33  ;;  %210 = vst.msk [vmem:[#allocation2 + $0x16] sm:$0x3] %vm208_vm4, %v719_v2  ;;  %v893_v5 = vsub.s32 0, %v95_v33 }
   0x7   :  { %637 = vmatpush3.msra.mxu0 %v85_v9  ;;  %v73_v23 = vld [vmem:[%s1030_s1 + $0x8] sm:$0xff]  ;;  %v72_v24 = vld [vmem:[%s1030_s1] sm:$0xff]  ;;  %211 = vst.msk [vmem:[#allocation2 + $0xa] sm:$0x3] %vm208_vm4, %v719_v2  ;;  %212 = vst.msk [vmem:[#allocation2 + $0x1a] sm:$0x3] %vm208_vm4, %v719_v2 }
   0x8   :  { %51 = vrot.lane.b32.xlu1 %v48_v7, %s720_s0  ;;  %43 = vrot.lane.b32.xlu0 %v40_v8, %s721_s21  ;;  %v192_v4 = vld [vmem:[%s1031_s2] sm:$0x1]  ;;  %s726_s14 = smov 48   ;;  %vm268_vm6 = vcmask 130048   ;;  %vm273_vm7 = vcmask 392192   ;;  %vm298_vm8 = vcmask 654336  }
   0x9   :  { %638 = vmatprep.subr.mxu0 %v719_v2  ;;  %v278_v28 = vld [vmem:[%s1033_s4] sm:$0xff] }
   0xa   :  { %639 = vmatpush3.msra.mxu0 %v84_v10  ;;  %v592_v10 = vld [vmem:[%s1032_s3] ss:$0 sm:$0xff] }
   0xb   :  { %640 = vmatprep.subr.mxu0 %v719_v2 }
   0xc   :  { %59 = vrot.lane.b32.xlu1 %v56_v11, %s723_s28  ;;  %57 = vrot.lane.b32.xlu0 %v55_v12, %s723_s28  ;;  %s725_s28 = smov 16  }
   0xd   :  { %641 = vmatpush3.msra.mxu0 %v83_v13  ;;  %v287_v13 = vld [vmem:[%s1033_s4 + $0x48] sm:$0xff] }
   0xe   :  { %642 = vmatprep.subr.mxu0 %v719_v2  ;;  %668 = vmatpush3.msra.mxu1 %v287_v13  ;;  %v234_v32 = vld [vmem:[#allocation2 + $0xa] sm:$0x3]  ;;  %v235_v33 = vld [vmem:[#allocation2 + $0x1a] sm:$0x3] }
   0xf   :  { %643 = vmatpush3.msra.mxu0 %v82_v14  ;;  %669 = vmatprep.subr.mxu1 %v719_v2 }
  0x10   :  { %644 = vmatprep.subr.mxu0 %v719_v2 }
  0x11   :  { %645 = vmatpush3.msra.mxu0 %v81_v15  ;;  %v286_v15 = vld [vmem:[%s1033_s4 + $0x40] sm:$0xff] }
  0x12   :  { %646 = vmatprep.subr.mxu0 %v719_v2  ;;  %670 = vmatpush3.msra.mxu1 %v286_v15 }
  0x13   :  { %647 = vmatpush3.msra.mxu0 %v80_v16  ;;  %671 = vmatprep.subr.mxu1 %v719_v2 }
  0x14   :  { %648 = vmatprep.subr.mxu0 %v719_v2 }
  0x15   :  { %649 = vmatpush3.msra.mxu0 %v79_v17  ;;  %v285_v17 = vld [vmem:[%s1033_s4 + $0x38] sm:$0xff] }
  0x16   :  { %650 = vmatprep.subr.mxu0 %v719_v2  ;;  %672 = vmatpush3.msra.mxu1 %v285_v17  ;;  %v393_v17 = vld [vmem:[%s1034_s5] sm:$0x1] }
  0x17   :  { %651 = vmatpush3.msra.mxu0 %v78_v18  ;;  %673 = vmatprep.subr.mxu1 %v719_v2 }
  0x18   :  { %652 = vmatprep.subr.mxu0 %v719_v2 }
  0x19   :  { %653 = vmatpush3.msra.mxu0 %v77_v19  ;;  %v284_v19 = vld [vmem:[%s1033_s4 + $0x30] sm:$0xff] }
  0x1a   :  { %654 = vmatprep.subr.mxu0 %v719_v2  ;;  %674 = vmatpush3.msra.mxu1 %v284_v19 }
  0x1b   :  { %655 = vmatpush3.msra.mxu0 %v76_v20  ;;  %675 = vmatprep.subr.mxu1 %v719_v2  ;;  %v283_v20 = vld [vmem:[%s1033_s4 + $0x28] sm:$0xff] }
  0x1c   :  { %656 = vmatprep.subr.mxu0 %v719_v2  ;;  %676 = vmatpush3.msra.mxu1 %v283_v20 }
  0x1d   :  { %657 = vmatpush3.msra.mxu0 %v75_v21  ;;  %677 = vmatprep.subr.mxu1 %v719_v2  ;;  %v282_v21 = vld [vmem:[%s1033_s4 + $0x20] sm:$0xff] }
  0x1e   :  { %658 = vmatprep.subr.mxu0 %v719_v2  ;;  %678 = vmatpush3.msra.mxu1 %v282_v21 }
  0x1f   :  { %659 = vmatpush3.msra.mxu0 %v74_v22  ;;  %679 = vmatprep.subr.mxu1 %v719_v2  ;;  %v281_v22 = vld [vmem:[%s1033_s4 + $0x18] sm:$0xff] }
  0x20   :  { %660 = vmatprep.subr.mxu0 %v719_v2  ;;  %680 = vmatpush3.msra.mxu1 %v281_v22  ;;  %v594_v22 = vld [vmem:[%s1035_s6] ss:$0 sm:$0xff] }
  0x21   :  { %661 = vmatpush3.msra.mxu0 %v73_v23  ;;  %681 = vmatprep.subr.mxu1 %v719_v2 }
  0x22   :  { %662 = vmatprep.subr.mxu0 %v719_v2 }
  0x23   :  { %663 = vmatpush3.msra.mxu0 %v72_v24  ;;  %v280_v24 = vld [vmem:[%s1033_s4 + $0x10] sm:$0xff] }
  0x24   :  { %682 = vmatpush3.msra.mxu1 %v280_v24 }
  0x25   :  { %683 = vmatprep.subr.mxu1 %v719_v2 }
  0x76   :  { %v50_v25 = vpop.permute.xlu1 %49  ;;  %v42_v26 = vpop.permute.xlu0 %41 }
  0x77   :  { %v64_v34 = vsel %vm63_vm1, %v785_v0, %v42_v26  ;;  %v279_v26 = vld [vmem:[%s1033_s4 + $0x8] sm:$0xff] }
  0x78   :  { %v67_v38 = vsel %vm66_vm2, %v64_v34, %v50_v25  ;;  %684 = vmatpush3.msra.mxu1 %v279_v26 }
  0x79   :  { %685 = vmatprep.subr.mxu1 %v719_v2 }
  0x7a   :  { %v52_v30 = vpop.permute.xlu1 %51  ;;  %v44_v31 = vpop.permute.xlu0 %43  ;;  %686 = vmatpush3.msra.mxu1 %v278_v28 }
  0x7b   :  { %v65_v35 = vsel %vm63_vm1, %v790_v1, %v44_v31  ;;  %690 = vmatprep.subr.mxu1 %v719_v2 }
  0x7c   :  { %v68_v37 = vsel %vm66_vm2, %v65_v35, %v52_v30 }
  0x7e   :  { %v60_v36 = vpop.permute.xlu1 %59  ;;  %v58_v39 = vpop.permute.xlu0 %57 }
  0x7f   :  { %v71_v41 = vsel %vm69_vm3, %v68_v37, %v60_v36  ;;  %v70_v42 = vsel %vm69_vm3, %v67_v38, %v58_v39  ;;  %v226_v39 = vld [vmem:[#allocation2 + $0x6] sm:$0x3] }
  0x80   :  { %v90_v43 = vcombine.low %v70_v42, %v71_v41  ;;  %v227_v41 = vld [vmem:[#allocation2 + $0x16] sm:$0x3] }
  0x82   :  { %v97_v44 = vrot.slane %v90_v43, %v877_v40 }
  0x84   :  { %665 = vmatmul.mubr.f32.vlgmr.msra.gmra.mxu0 %v97_v44 }
 0x144   :  { %v165_v45 = vpop.f32.mrf.mxu0 }
 0x145   :  { %v170_v46 = vsel %vm169_vm5, %v165_v45, 0.0  ;;  %v178_v47 = vmul.f32 %v165_v45, %v165_v45 }
 0x146   :  { %v171_v48 = vrot.slane %v170_v46, 4  ;;  %v666_v49 = vpop.f32.mrf.mxu0 }
 0x147   :  { %v179_v50 = vsel %vm169_vm5, %v178_v47, 0.0 }
 0x148   :  { %v172_v51 = vadd.f32 %v171_v48, %v170_v46  ;;  %v180_v52 = vrot.slane %v179_v50, 4 }
 0x14a   :  { %v173_v53 = vrot.slane %v172_v51, 2  ;;  %v181_v54 = vadd.f32 %v180_v52, %v179_v50 }
 0x14c   :  { %v174_v55 = vadd.f32 %v173_v53, %v172_v51  ;;  %v182_v56 = vrot.slane %v181_v54, 2 }
 0x14e   :  { %v175_v57 = vrot.slane %v174_v55, 1  ;;  %v183_v58 = vadd.f32 %v182_v56, %v181_v54 }
 0x150   :  { %v176_v59 = vadd.f32 %v175_v57, %v174_v55  ;;  %v184_v60 = vrot.slane %v183_v58, 1 }
 0x152   :  { %v177_v61 = vmul.f32 0.25, %v176_v59  ;;  %v185_v62 = vadd.f32 %v184_v60, %v183_v58 }
 0x154   :  { %v186_v63 = vmul.f32 0.25, %v185_v62  ;;  %v187_v0 = vmul.f32 %v177_v61, %v177_v61  ;;  %v189_v8 = vsub.f32 %v165_v45, %v177_v61 }
 0x156   :  { %v188_v1 = vsub.f32 %v186_v63, %v187_v0 }
 0x158   :  { %v190_v3 = vadd.f32 1e-05, %v188_v1 }
 0x15a   :  { %713 = vrsqrt.f32 %v190_v3 }
 0x167   :  { %v714_v6 = vpop.eup %713 }
 0x168   :  { %v193_v7 = vmul.f32 %v714_v6, %v192_v4 }
 0x16a   :  { %v197_v9 = vrot.slane %v193_v7, %v893_v5 }
 0x16c   :  { %v198_v11 = vmul.f32 %v197_v9, %v189_v8 }
 0x16e   :  { %v899_v12 = vadd.f32 %v592_v10, %v198_v11 }
 0x170   :  { %v207_v14 = vmax.f32 %v899_v12, 0.0 }
 0x172   :  { %v220_v16 = vrot.slane %v207_v14, %v877_v40 }
 0x174   :  { %v221_v18 = vcombine.high %v220_v16, %v220_v16  ;;  %224 = vst.msk [vmem:[#allocation2 + $0x8] sm:$0x3] %vm208_vm4, %v220_v16 }
 0x176   :  { %225 = vst.msk [vmem:[#allocation2 + $0x18] sm:$0x3] %vm208_vm4, %v221_v18 }
 0x17b   :  { %v228_v23 = vld [vmem:[#allocation2 + $0x7] sm:$0x3]  ;;  %v232_v30 = vld [vmem:[#allocation2 + $0x9] sm:$0x3] }
 0x17c   :  { %238 = vrot.lane.b32.xlu0 %v228_v23, %s725_s28  ;;  %v230_v27 = vld [vmem:[#allocation2 + $0x8] sm:$0x3] }
 0x17d   :  { %v229_v25 = vld [vmem:[#allocation2 + $0x17] sm:$0x3]  ;;  %v233_v31 = vld [vmem:[#allocation2 + $0x19] sm:$0x3] }
 0x17e   :  { %240 = vrot.lane.b32.xlu1 %v229_v25, %s725_s28  ;;  %v231_v29 = vld [vmem:[#allocation2 + $0x18] sm:$0x3]  ;;  %v453_v25 = vld [vmem:[%s1036_s7 + $0x28] sm:$0xff] }
 0x180   :  { %246 = vrot.lane.b32.xlu0 %v230_v27, %s721_s21  ;;  %v452_v27 = vld [vmem:[%s1036_s7 + $0x20] sm:$0xff] }
 0x182   :  { %248 = vrot.lane.b32.xlu1 %v231_v29, %s721_s21  ;;  %v451_v29 = vld [vmem:[%s1036_s7 + $0x18] sm:$0xff] }
 0x184   :  { %254 = vrot.lane.b32.xlu0 %v232_v30, %s726_s14 }
 0x186   :  { %256 = vrot.lane.b32.xlu1 %v233_v31, %s726_s14  ;;  %v450_v31 = vld [vmem:[%s1036_s7 + $0x10] sm:$0xff] }
 0x188   :  { %262 = vrot.lane.b32.xlu0 %v234_v32, %s720_s0  ;;  %v449_v32 = vld [vmem:[%s1036_s7 + $0x8] sm:$0xff] }
 0x18a   :  { %264 = vrot.lane.b32.xlu1 %v235_v33, %s720_s0  ;;  %v448_v33 = vld [vmem:[%s1036_s7] sm:$0xff] }
 0x1ee   :  { %v239_v34 = vpop.permute.xlu0 %238 }
 0x1ef   :  { %v269_v43 = vsel %vm268_vm6, %v226_v39, %v239_v34 }
 0x1f0   :  { %v241_v35 = vpop.permute.xlu1 %240 }
 0x1f1   :  { %v270_v44 = vsel %vm268_vm6, %v227_v41, %v241_v35 }
 0x1f2   :  { %v247_v36 = vpop.permute.xlu0 %246 }
 0x1f3   :  { %v271_v46 = vsel %vm63_vm1, %v269_v43, %v247_v36 }
 0x1f4   :  { %v249_v37 = vpop.permute.xlu1 %248 }
 0x1f5   :  { %v272_v47 = vsel %vm63_vm1, %v270_v44, %v249_v37 }
 0x1f6   :  { %v255_v38 = vpop.permute.xlu0 %254 }
 0x1f7   :  { %v274_v48 = vsel %vm273_vm7, %v271_v46, %v255_v38 }
 0x1f8   :  { %v257_v42 = vpop.permute.xlu1 %256 }
 0x1f9   :  { %v275_v49 = vsel %vm273_vm7, %v272_v47, %v257_v42 }
 0x1fa   :  { %v263_v45 = vpop.permute.xlu0 %262 }
 0x1fb   :  { %v276_v51 = vsel %vm66_vm2, %v274_v48, %v263_v45 }
 0x1fc   :  { %v265_v50 = vpop.permute.xlu1 %264 }
 0x1fd   :  { %v277_v52 = vsel %vm66_vm2, %v275_v49, %v265_v50 }
 0x1fe   :  { %v290_v53 = vcombine.low %v276_v51, %v277_v52 }
 0x200   :  { %v297_v54 = vrot.slane %v290_v53, %v877_v40 }
 0x202   :  { %688 = vmatmul.mubr.msk.f32.vlgmr.msra.gmra.mxu1 %vm298_vm8, %v297_v54 }
 0x203   :  { %702 = vmatprep.mubr.msk.f32.mxu1 %vm722_vm0, %v719_v2  ;;  %691 = vmatpush3.msra.mxu1 %v453_v25 }
 0x204   :  { %692 = vmatprep.subr.mxu1 %v719_v2 }
 0x205   :  { %693 = vmatpush3.msra.mxu1 %v452_v27 }
 0x206   :  { %694 = vmatprep.subr.mxu1 %v719_v2 }
 0x207   :  { %695 = vmatpush3.msra.mxu1 %v451_v29 }
 0x208   :  { %696 = vmatprep.subr.mxu1 %v719_v2 }
 0x209   :  { %697 = vmatpush3.msra.mxu1 %v450_v31 }
 0x20a   :  { %698 = vmatprep.subr.mxu1 %v719_v2 }
 0x20b   :  { %699 = vmatpush3.msra.mxu1 %v449_v32 }
 0x20c   :  { %700 = vmatprep.subr.mxu1 %v719_v2 }
 0x20d   :  { %701 = vmatpush3.msra.mxu1 %v448_v33 }
 0x2c2   :  { %v367_v55 = vpop.f32.mrf.mxu1 }
 0x2c3   :  { %v371_v56 = vsel %vm169_vm5, %v367_v55, 0.0  ;;  %v379_v57 = vmul.f32 %v367_v55, %v367_v55 }
 0x2c4   :  { %v372_v58 = vrot.slane %v371_v56, 4  ;;  %v689_v59 = vpop.f32.mrf.mxu1 }
 0x2c5   :  { %v380_v60 = vsel %vm169_vm5, %v379_v57, 0.0 }
 0x2c6   :  { %v373_v61 = vadd.f32 %v372_v58, %v371_v56  ;;  %v381_v62 = vrot.slane %v380_v60, 4 }
 0x2c8   :  { %v374_v63 = vrot.slane %v373_v61, 2  ;;  %v382_v0 = vadd.f32 %v381_v62, %v380_v60 }
 0x2ca   :  { %v375_v1 = vadd.f32 %v374_v63, %v373_v61  ;;  %v383_v3 = vrot.slane %v382_v0, 2 }
 0x2cc   :  { %v376_v4 = vrot.slane %v375_v1, 1  ;;  %v384_v6 = vadd.f32 %v383_v3, %v382_v0 }
 0x2ce   :  { %v377_v7 = vadd.f32 %v376_v4, %v375_v1  ;;  %v385_v8 = vrot.slane %v384_v6, 1 }
 0x2d0   :  { %v378_v9 = vmul.f32 0.25, %v377_v7  ;;  %v386_v10 = vadd.f32 %v385_v8, %v384_v6 }
 0x2d2   :  { %v387_v11 = vmul.f32 0.25, %v386_v10  ;;  %v388_v13 = vmul.f32 %v378_v9, %v378_v9  ;;  %v390_v20 = vsub.f32 %v367_v55, %v378_v9  ;;  %v558_v10 = vld [vmem:[%s1037_s8] sm:$0x1] }
 0x2d4   :  { %v389_v15 = vsub.f32 %v387_v11, %v388_v13 }
 0x2d6   :  { %v391_v16 = vadd.f32 1e-05, %v389_v15 }
 0x2d8   :  { %715 = vrsqrt.f32 %v391_v16 }
 0x2e5   :  { %v716_v18 = vpop.eup %715 }
 0x2e6   :  { %v394_v19 = vmul.f32 %v716_v18, %v393_v17  ;;  %v596_v17 = vld [vmem:[%s1038_s9] ss:$0 sm:$0xff] }
 0x2e8   :  { %v398_v21 = vrot.slane %v394_v19, %v893_v5 }
 0x2ea   :  { %v399_v23 = vmul.f32 %v398_v21, %v390_v20 }
 0x2ec   :  { %v407_v24 = vadd.f32 %v594_v22, %v399_v23 }
 0x2ee   :  { %v408_v26 = vmax.f32 %v407_v24, 0.0 }
 0x2f0   :  { %v416_v28 = vrot.slane %v408_v26, %v877_v40 }
 0x2f2   :  { %v417_v30 = vcombine.high %v416_v28, %v416_v28  ;;  %420 = vst.msk [vmem:[#allocation2 + $0x8] sm:$0x3] %vm208_vm4, %v416_v28 }
 0x2f4   :  { %421 = vst.msk [vmem:[#allocation2 + $0x18] sm:$0x3] %vm208_vm4, %v417_v30 }
 0x2f9   :  { %v424_v34 = vld [vmem:[#allocation2 + $0x8] sm:$0x3] }
 0x2fa   :  { %430 = vrot.lane.b32.xlu0 %v424_v34, %s725_s28  ;;  %v426_v36 = vld [vmem:[#allocation2 + $0x9] sm:$0x3]  ;;  %v422_v41 = vld [vmem:[#allocation2 + $0x7] sm:$0x3] }
 0x2fb   :  { %v425_v35 = vld [vmem:[#allocation2 + $0x18] sm:$0x3] }
 0x2fc   :  { %432 = vrot.lane.b32.xlu1 %v425_v35, %s725_s28  ;;  %v427_v37 = vld [vmem:[#allocation2 + $0x19] sm:$0x3]  ;;  %v423_v42 = vld [vmem:[#allocation2 + $0x17] sm:$0x3] }
 0x2fe   :  { %438 = vrot.lane.b32.xlu0 %v426_v36, %s721_s21 }
 0x300   :  { %440 = vrot.lane.b32.xlu1 %v427_v37, %s721_s21 }
 0x36c   :  { %v431_v38 = vpop.permute.xlu0 %430 }
 0x36d   :  { %v444_v43 = vsel %vm268_vm6, %v422_v41, %v431_v38 }
 0x36e   :  { %v433_v39 = vpop.permute.xlu1 %432 }
 0x36f   :  { %v445_v44 = vsel %vm268_vm6, %v423_v42, %v433_v39 }
 0x370   :  { %v439_v2 = vpop.permute.xlu0 %438 }
 0x371   :  { %v446_v46 = vsel %vm63_vm1, %v444_v43, %v439_v2 }
 0x372   :  { %v441_v45 = vpop.permute.xlu1 %440 }
 0x373   :  { %v447_v47 = vsel %vm63_vm1, %v445_v44, %v441_v45 }
 0x374   :  { %v456_v48 = vcombine.low %v446_v46, %v447_v47 }
 0x376   :  { %v463_v49 = vrot.slane %v456_v48, %v877_v40 }
 0x378   :  { %703 = vmatmul.mubr.msk.f32.vlgmr.msra.gmra.mxu1 %vm273_vm7, %v463_v49 }
 0x438   :  { %v532_v50 = vpop.f32.mrf.mxu1 }
 0x439   :  { %v536_v51 = vsel %vm169_vm5, %v532_v50, 0.0  ;;  %v544_v52 = vmul.f32 %v532_v50, %v532_v50 }
 0x43a   :  { %v537_v53 = vrot.slane %v536_v51, 4  ;;  %v704_v54 = vpop.f32.mrf.mxu1 }
 0x43b   :  { %v545_v55 = vsel %vm169_vm5, %v544_v52, 0.0 }
 0x43c   :  { %v538_v56 = vadd.f32 %v537_v53, %v536_v51  ;;  %v546_v57 = vrot.slane %v545_v55, 4 }
 0x43e   :  { %v539_v58 = vrot.slane %v538_v56, 2  ;;  %v547_v59 = vadd.f32 %v546_v57, %v545_v55 }
 0x440   :  { %v540_v60 = vadd.f32 %v539_v58, %v538_v56  ;;  %v548_v61 = vrot.slane %v547_v59, 2 }
 0x442   :  { %v541_v62 = vrot.slane %v540_v60, 1  ;;  %v549_v63 = vadd.f32 %v548_v61, %v547_v59 }
 0x444   :  { %v542_v0 = vadd.f32 %v541_v62, %v540_v60  ;;  %v550_v1 = vrot.slane %v549_v63, 1 }
 0x446   :  { %v543_v3 = vmul.f32 0.25, %v542_v0  ;;  %v551_v4 = vadd.f32 %v550_v1, %v549_v63 }
 0x448   :  { %v552_v6 = vmul.f32 0.25, %v551_v4  ;;  %v553_v7 = vmul.f32 %v543_v3, %v543_v3  ;;  %v555_v15 = vsub.f32 %v532_v50, %v543_v3 }
 0x44a   :  { %v554_v8 = vsub.f32 %v552_v6, %v553_v7 }
 0x44c   :  { %v556_v9 = vadd.f32 1e-05, %v554_v8 }
 0x44e   :  { %717 = vrsqrt.f32 %v556_v9 }
 0x45b   :  { %v718_v11 = vpop.eup %717 }
 0x45c   :  { %v559_v13 = vmul.f32 %v718_v11, %v558_v10 }
 0x45e   :  { %v563_v16 = vrot.slane %v559_v13, %v893_v5 }
 0x460   :  { %v564_v18 = vmul.f32 %v563_v16, %v555_v15 }
 0x462   :  { %v572_v19 = vadd.f32 %v596_v17, %v564_v18 }
 0x464   :  { %v573_v20 = vadd.f32 %v572_v19, %v207_v14 }
 0x466   :  { %v574_v21 = vmax.f32 %v573_v20, 0.0 }
 0x468   :  { %v582_v22 = vrot.slane %v574_v21, %v877_v40 }
 0x46a   :  { %v583_v23 = vcombine.high %v582_v22, %v582_v22  ;;  %586 = vst.msk [vmem:[%s1039_s10] sm:$0x3] %vm208_vm4, %v582_v22 }
 0x46c   :  { %587 = vst.msk [vmem:[%s1039_s10 + $0x2] sm:$0x3] %vm208_vm4, %v583_v23 }

// kernel: resnet_forward.5
= control target key start
LH: loop header
LB: loop body
LE: loop exit
PB: predicated region body
PF: predicated region fallthrough
CT: control target
= control target key end

     0   :  { %v641_v2 = vmov 0.0   ;;  %s642_s21 = smov 32   ;;  %vm644_vm0 = vmmov 0   ;;  %s645_s28 = smov 48   ;;  %vm63_vm1 = vcmask 130048   ;;  %vm66_vm2 = vcmask 261120   ;;  %s897_s0 = inlined_call_operand.vmem [shape: f32[2,7,16], index: 0, kind: input, shape index: {}]   ;;  %s898_s1 = inlined_call_operand.vmem [shape: f32[64,16], index: 1, kind: input, shape index: {}]   ;;  %s899_s4 = inlined_call_operand.vmem [shape: f32[80,16], index: 4, kind: input, shape index: {}]   ;;  %s900_s2 = inlined_call_operand.vmem [shape: f32[1,16], index: 2, kind: input, shape index: {}]   ;;  %s901_s3 = inlined_call_operand.vmem [shape: f32[1,16], index: 3, kind: input, shape index: {}]   ;;  %s902_s7 = inlined_call_operand.vmem [shape: f32[48,16], index: 7, kind: input, shape index: {}]   ;;  %s903_s5 = inlined_call_operand.vmem [shape: f32[1,16], index: 5, kind: input, shape index: {}]   ;;  %s904_s6 = inlined_call_operand.vmem [shape: f32[1,16], index: 6, kind: input, shape index: {}]   ;;  %s905_s8 = inlined_call_operand.vmem [shape: f32[1,16], index: 8, kind: input, shape index: {}]   ;;  %s906_s9 = inlined_call_operand.vmem [shape: f32[1,16], index: 9, kind: input, shape index: {}]   ;;  %s907_s10 = inlined_call_operand.vmem [shape: f32[2,4,16], index: 10, kind: output, shape index: {}]  }
   0x1   :  { %v35_v0 = vld [vmem:[%s897_s0] sm:$0x7f]  ;;  %v36_v1 = vld [vmem:[%s897_s0 + $0x8] sm:$0x7f]  ;;  %572 = vmatprep.subr.mxu0 %v641_v2  ;;  %v79_v3 = vld [vmem:[%s898_s1 + $0x38] sm:$0xff]  ;;  %591 = vmatprep.subr.mxu1 %v641_v2  ;;  %s643_s0 = smov 16   ;;  %v180_v53 = vlaneseq }
   0x2   :  { %v47_v4 = vrot.slane %v35_v0, 2  ;;  %v39_v5 = vrot.slane %v35_v0, 1  ;;  %573 = vmatpush3.msra.mxu0 %v79_v3  ;;  %v78_v6 = vld [vmem:[%s898_s1 + $0x30] sm:$0xff]  ;;  %v48_v7 = vrot.slane %v36_v1, 2  ;;  %v40_v8 = vrot.slane %v36_v1, 1  ;;  %v77_v9 = vld [vmem:[%s898_s1 + $0x28] sm:$0xff]  ;;  %588 = vmatprep.mubr.msk.f32.mxu0 %vm644_vm0, %v641_v2 }
   0x3   :  { %574 = vmatprep.subr.mxu0 %v641_v2  ;;  %611 = vmatprep.mubr.msk.f32.mxu1 %vm644_vm0, %v641_v2  ;;  %v76_v10 = vld [vmem:[%s898_s1 + $0x20] sm:$0xff]  ;;  %v56_v11 = vrot.slane %v36_v1, 3  ;;  %v55_v12 = vrot.slane %v35_v0, 3  ;;  %v75_v13 = vld [vmem:[%s898_s1 + $0x18] sm:$0xff]  ;;  %v74_v14 = vld [vmem:[%s898_s1 + $0x10] sm:$0xff]  ;;  %vm69_vm3 = vcmask 392192  }
   0x4   :  { %49 = vrot.lane.b32.xlu1 %v47_v4, %s642_s21  ;;  %41 = vrot.lane.b32.xlu0 %v39_v5, %s643_s0  ;;  %v73_v15 = vld [vmem:[%s898_s1 + $0x8] sm:$0xff]  ;;  %v72_v16 = vld [vmem:[%s898_s1] sm:$0xff]  ;;  %vm83_vm4 = vcmask 523264   ;;  %vm194_vm5 = vcmask 123904   ;;  %v181_v54 = vshrl.u32 %v180_v53, 7  ;;  %vm202_vm6 = vcmask 125952  }
   0x5   :  { %575 = vmatpush3.msra.mxu0 %v78_v6  ;;  %195 = vst.msk [vmem:[#allocation2 + $0x6] sm:$0x3] %vm194_vm5, %v641_v2  ;;  %196 = vst.msk [vmem:[#allocation2 + $0x16] sm:$0x3] %vm194_vm5, %v641_v2  ;;  %v264_v30 = vld [vmem:[%s899_s4 + $0x48] sm:$0xff]  ;;  %v263_v63 = vld [vmem:[%s899_s4 + $0x40] sm:$0xff] }
   0x6   :  { %576 = vmatprep.subr.mxu0 %v641_v2  ;;  %197 = vst.msk [vmem:[#allocation2 + $0xc] sm:$0x3] %vm194_vm5, %v641_v2  ;;  %198 = vst.msk [vmem:[#allocation2 + $0x1c] sm:$0x3] %vm194_vm5, %v641_v2  ;;  %592 = vmatpush3.msra.mxu1 %v264_v30  ;;  %v178_v55 = vld [vmem:[%s900_s2] sm:$0x1] }
   0x7   :  { %577 = vmatpush3.msra.mxu0 %v77_v9  ;;  %593 = vmatprep.subr.mxu1 %v641_v2  ;;  %v774_v56 = vsub.s32 0, %v181_v54  ;;  %v540_v61 = vld [vmem:[%s901_s3] ss:$0 sm:$0xff]  ;;  %v261_v4 = vld [vmem:[%s899_s4 + $0x30] sm:$0xff]  ;;  %v260_v6 = vld [vmem:[%s899_s4 + $0x28] sm:$0xff]  ;;  %s646_s17 = smov 64  }
   0x8   :  { %51 = vrot.lane.b32.xlu1 %v48_v7, %s642_s21  ;;  %43 = vrot.lane.b32.xlu0 %v40_v8, %s643_s0  ;;  %v259_v7 = vld [vmem:[%s899_s4 + $0x20] sm:$0xff]  ;;  %v258_v8 = vld [vmem:[%s899_s4 + $0x18] sm:$0xff]  ;;  %vm268_vm7 = vcmask 654336  }
   0x9   :  { %578 = vmatprep.subr.mxu0 %v641_v2  ;;  %594 = vmatpush3.msra.mxu1 %v263_v63  ;;  %v363_v63 = vld [vmem:[%s903_s5] sm:$0x1] }
   0xa   :  { %579 = vmatpush3.msra.mxu0 %v76_v10  ;;  %595 = vmatprep.subr.mxu1 %v641_v2  ;;  %v257_v10 = vld [vmem:[%s899_s4 + $0x10] sm:$0xff] }
   0xb   :  { %580 = vmatprep.subr.mxu0 %v641_v2 }
   0xc   :  { %59 = vrot.lane.b32.xlu1 %v56_v11, %s645_s28  ;;  %57 = vrot.lane.b32.xlu0 %v55_v12, %s645_s28  ;;  %v256_v12 = vld [vmem:[%s899_s4 + $0x8] sm:$0xff] }
   0xd   :  { %581 = vmatpush3.msra.mxu0 %v75_v13 }
   0xe   :  { %582 = vmatprep.subr.mxu0 %v641_v2 }
   0xf   :  { %583 = vmatpush3.msra.mxu0 %v74_v14  ;;  %v255_v14 = vld [vmem:[%s899_s4] sm:$0xff] }
  0x10   :  { %584 = vmatprep.subr.mxu0 %v641_v2 }
  0x11   :  { %585 = vmatpush3.msra.mxu0 %v73_v15 }
  0x12   :  { %586 = vmatprep.subr.mxu0 %v641_v2 }
  0x13   :  { %587 = vmatpush3.msra.mxu0 %v72_v16 }
  0x14   :  { %614 = vmatprep.subr.mxu0 %v641_v2 }
  0x76   :  { %v50_v17 = vpop.permute.xlu1 %49  ;;  %v42_v18 = vpop.permute.xlu0 %41 }
  0x77   :  { %v64_v21 = vsel %vm63_vm1, %v35_v0, %v42_v18 }
  0x78   :  { %v67_v25 = vsel %vm66_vm2, %v64_v21, %v50_v17 }
  0x7a   :  { %v52_v19 = vpop.permute.xlu1 %51  ;;  %v44_v20 = vpop.permute.xlu0 %43 }
  0x7b   :  { %v65_v22 = vsel %vm63_vm1, %v36_v1, %v44_v20  ;;  %v262_v1 = vld [vmem:[%s899_s4 + $0x38] sm:$0xff] }
  0x7c   :  { %v68_v24 = vsel %vm66_vm2, %v65_v22, %v52_v19  ;;  %596 = vmatpush3.msra.mxu1 %v262_v1 }
  0x7d   :  { %597 = vmatprep.subr.mxu1 %v641_v2 }
  0x7e   :  { %v60_v23 = vpop.permute.xlu1 %59  ;;  %v58_v26 = vpop.permute.xlu0 %57  ;;  %598 = vmatpush3.msra.mxu1 %v261_v4 }
  0x7f   :  { %v71_v27 = vsel %vm69_vm3, %v68_v24, %v60_v23  ;;  %v70_v28 = vsel %vm69_vm3, %v67_v25, %v58_v26  ;;  %599 = vmatprep.subr.mxu1 %v641_v2 }
  0x80   :  { %v82_v29 = vcombine.low %v70_v28, %v71_v27  ;;  %600 = vmatpush3.msra.mxu1 %v260_v6  ;;  %v542_v6 = vld [vmem:[%s904_s6] ss:$0 sm:$0xff] }
  0x81   :  { %601 = vmatprep.subr.mxu1 %v641_v2 }
  0x82   :  { %589 = vmatmul.mubr.msk.f32.vlgmr.msra.gmra.mxu0 %vm83_vm4, %v82_v29  ;;  %602 = vmatpush3.msra.mxu1 %v259_v7 }
  0x83   :  { %626 = vmatprep.mubr.msk.f32.mxu0 %vm644_vm0, %v641_v2  ;;  %603 = vmatprep.subr.mxu1 %v641_v2 }
  0x84   :  { %604 = vmatpush3.msra.mxu1 %v258_v8  ;;  %v414_v8 = vld [vmem:[%s902_s7 + $0x20] sm:$0xff] }
  0x85   :  { %605 = vmatprep.subr.mxu1 %v641_v2 }
  0x86   :  { %606 = vmatpush3.msra.mxu1 %v257_v10  ;;  %v413_v10 = vld [vmem:[%s902_s7 + $0x18] sm:$0xff] }
  0x87   :  { %607 = vmatprep.subr.mxu1 %v641_v2 }
  0x88   :  { %608 = vmatpush3.msra.mxu1 %v256_v12  ;;  %v412_v12 = vld [vmem:[%s902_s7 + $0x10] sm:$0xff] }
  0x89   :  { %609 = vmatprep.subr.mxu1 %v641_v2 }
  0x8a   :  { %610 = vmatpush3.msra.mxu1 %v255_v14  ;;  %v411_v14 = vld [vmem:[%s902_s7 + $0x8] sm:$0xff] }
 0x142   :  { %v152_v31 = vpop.f32.mrf.mxu0 }
 0x143   :  { %v156_v32 = vsel %vm63_vm1, %v152_v31, 0.0  ;;  %v164_v33 = vmul.f32 %v152_v31, %v152_v31 }
 0x144   :  { %v157_v34 = vrot.slane %v156_v32, 4  ;;  %v590_v35 = vpop.f32.mrf.mxu0 }
 0x145   :  { %v165_v36 = vsel %vm63_vm1, %v164_v33, 0.0 }
 0x146   :  { %v158_v37 = vadd.f32 %v157_v34, %v156_v32  ;;  %v166_v38 = vrot.slane %v165_v36, 4 }
 0x148   :  { %v159_v39 = vrot.slane %v158_v37, 2  ;;  %v167_v40 = vadd.f32 %v166_v38, %v165_v36 }
 0x14a   :  { %v160_v41 = vadd.f32 %v159_v39, %v158_v37  ;;  %v168_v42 = vrot.slane %v167_v40, 2  ;;  %v415_v39 = vld [vmem:[%s902_s7 + $0x28] sm:$0xff] }
 0x14b   :  { %615 = vmatpush3.msra.mxu0 %v415_v39 }
 0x14c   :  { %v161_v43 = vrot.slane %v160_v41, 1  ;;  %v169_v44 = vadd.f32 %v168_v42, %v167_v40  ;;  %616 = vmatprep.subr.mxu0 %v641_v2 }
 0x14d   :  { %617 = vmatpush3.msra.mxu0 %v414_v8 }
 0x14e   :  { %v162_v45 = vadd.f32 %v161_v43, %v160_v41  ;;  %v170_v46 = vrot.slane %v169_v44, 1  ;;  %618 = vmatprep.subr.mxu0 %v641_v2 }
 0x14f   :  { %619 = vmatpush3.msra.mxu0 %v413_v10 }
 0x150   :  { %v163_v47 = vmul.f32 0.125, %v162_v45  ;;  %v171_v48 = vadd.f32 %v170_v46, %v169_v44  ;;  %620 = vmatprep.subr.mxu0 %v641_v2 }
 0x151   :  { %621 = vmatpush3.msra.mxu0 %v412_v12 }
 0x152   :  { %v172_v49 = vmul.f32 0.125, %v171_v48  ;;  %v173_v50 = vmul.f32 %v163_v47, %v163_v47  ;;  %v175_v59 = vsub.f32 %v152_v31, %v163_v47  ;;  %622 = vmatprep.subr.mxu0 %v641_v2 }
 0x153   :  { %623 = vmatpush3.msra.mxu0 %v411_v14 }
 0x154   :  { %v174_v51 = vsub.f32 %v172_v49, %v173_v50  ;;  %624 = vmatprep.subr.mxu0 %v641_v2 }
 0x156   :  { %v176_v52 = vadd.f32 1e-05, %v174_v51 }
 0x158   :  { %635 = vrsqrt.f32 %v176_v52 }
 0x165   :  { %v636_v57 = vpop.eup %635 }
 0x166   :  { %v179_v58 = vmul.f32 %v636_v57, %v178_v55 }
 0x168   :  { %v183_v60 = vrot.slane %v179_v58, %v774_v56 }
 0x16a   :  { %v184_v62 = vmul.f32 %v183_v60, %v175_v59 }
 0x16c   :  { %v192_v0 = vadd.f32 %v540_v61, %v184_v62 }
 0x16e   :  { %v787_v3 = vmax.f32 %v192_v0, 0.0 }
 0x170   :  { %v200_v5 = vcombine.high %v787_v3, %v787_v3  ;;  %203 = vst.msk [vmem:[#allocation2 + $0x8] sm:$0xf] %vm202_vm6, %v787_v3 }
 0x172   :  { %204 = vst.msk [vmem:[#allocation2 + $0x18] sm:$0xf] %vm202_vm6, %v200_v5 }
 0x177   :  { %v207_v9 = vld [vmem:[#allocation2 + $0x7] sm:$0xf] }
 0x178   :  { %217 = vrot.lane.b32.xlu0 %v207_v9, %s643_s0  ;;  %v209_v13 = vld [vmem:[#allocation2 + $0x8] sm:$0xf] }
 0x179   :  { %v208_v11 = vld [vmem:[#allocation2 + $0x17] sm:$0xf]  ;;  %v211_v16 = vld [vmem:[#allocation2 + $0x9] sm:$0xf] }
 0x17a   :  { %219 = vrot.lane.b32.xlu1 %v208_v11, %s643_s0  ;;  %v210_v15 = vld [vmem:[#allocation2 + $0x18] sm:$0xf]  ;;  %v213_v18 = vld [vmem:[#allocation2 + $0xa] sm:$0xf]  ;;  %v205_v26 = vld [vmem:[#allocation2 + $0x6] sm:$0xf] }
 0x17b   :  { %v212_v17 = vld [vmem:[#allocation2 + $0x19] sm:$0xf] }
 0x17c   :  { %225 = vrot.lane.b32.xlu0 %v209_v13, %s642_s21  ;;  %v214_v19 = vld [vmem:[#allocation2 + $0x1a] sm:$0xf]  ;;  %v206_v27 = vld [vmem:[#allocation2 + $0x16] sm:$0xf] }
 0x17e   :  { %227 = vrot.lane.b32.xlu1 %v210_v15, %s642_s21  ;;  %v410_v15 = vld [vmem:[%s902_s7] sm:$0xff] }
 0x17f   :  { %625 = vmatpush3.msra.mxu0 %v410_v15 }
 0x180   :  { %233 = vrot.lane.b32.xlu0 %v211_v16, %s645_s28 }
 0x182   :  { %235 = vrot.lane.b32.xlu1 %v212_v17, %s645_s28 }
 0x184   :  { %241 = vrot.lane.b32.xlu0 %v213_v18, %s646_s17 }
 0x186   :  { %243 = vrot.lane.b32.xlu1 %v214_v19, %s646_s17 }
 0x1ea   :  { %v218_v20 = vpop.permute.xlu0 %217 }
 0x1eb   :  { %v247_v28 = vsel %vm63_vm1, %v205_v26, %v218_v20 }
 0x1ec   :  { %v220_v21 = vpop.permute.xlu1 %219 }
 0x1ed   :  { %v248_v29 = vsel %vm63_vm1, %v206_v27, %v220_v21 }
 0x1ee   :  { %v226_v22 = vpop.permute.xlu0 %225 }
 0x1ef   :  { %v249_v31 = vsel %vm66_vm2, %v247_v28, %v226_v22 }
 0x1f0   :  { %v228_v23 = vpop.permute.xlu1 %227 }
 0x1f1   :  { %v250_v32 = vsel %vm66_vm2, %v248_v29, %v228_v23 }
 0x1f2   :  { %v234_v24 = vpop.permute.xlu0 %233 }
 0x1f3   :  { %v251_v33 = vsel %vm69_vm3, %v249_v31, %v234_v24 }
 0x1f4   :  { %v236_v25 = vpop.permute.xlu1 %235 }
 0x1f5   :  { %v252_v34 = vsel %vm69_vm3, %v250_v32, %v236_v25 }
 0x1f6   :  { %v242_v30 = vpop.permute.xlu0 %241 }
 0x1f7   :  { %v253_v36 = vsel %vm83_vm4, %v251_v33, %v242_v30 }
 0x1f8   :  { %v244_v35 = vpop.permute.xlu1 %243 }
 0x1f9   :  { %v254_v37 = vsel %vm83_vm4, %v252_v34, %v244_v35 }
 0x1fa   :  { %v267_v38 = vcombine.low %v253_v36, %v254_v37 }
 0x1fc   :  { %612 = vmatmul.mubr.msk.f32.vlgmr.msra.gmra.mxu1 %vm268_vm7, %v267_v38 }
 0x2bc   :  { %v337_v40 = vpop.f32.mrf.mxu1 }
 0x2bd   :  { %v341_v41 = vsel %vm63_vm1, %v337_v40, 0.0  ;;  %v349_v42 = vmul.f32 %v337_v40, %v337_v40 }
 0x2be   :  { %v342_v43 = vrot.slane %v341_v41, 4  ;;  %v613_v44 = vpop.f32.mrf.mxu1 }
 0x2bf   :  { %v350_v45 = vsel %vm63_vm1, %v349_v42, 0.0 }
 0x2c0   :  { %v343_v46 = vadd.f32 %v342_v43, %v341_v41  ;;  %v351_v47 = vrot.slane %v350_v45, 4 }
 0x2c2   :  { %v344_v48 = vrot.slane %v343_v46, 2  ;;  %v352_v49 = vadd.f32 %v351_v47, %v350_v45 }
 0x2c4   :  { %v345_v50 = vadd.f32 %v344_v48, %v343_v46  ;;  %v353_v51 = vrot.slane %v352_v49, 2 }
 0x2c6   :  { %v346_v52 = vrot.slane %v345_v50, 1  ;;  %v354_v53 = vadd.f32 %v353_v51, %v352_v49 }
 0x2c8   :  { %v347_v54 = vadd.f32 %v346_v52, %v345_v50  ;;  %v355_v55 = vrot.slane %v354_v53, 1  ;;  %v513_v52 = vld [vmem:[%s905_s8] sm:$0x1] }
 0x2ca   :  { %v348_v57 = vmul.f32 0.125, %v347_v54  ;;  %v356_v58 = vadd.f32 %v355_v55, %v354_v53 }
 0x2cc   :  { %v357_v59 = vmul.f32 0.125, %v356_v58  ;;  %v358_v60 = vmul.f32 %v348_v57, %v348_v57  ;;  %v360_v4 = vsub.f32 %v337_v40, %v348_v57  ;;  %v544_v58 = vld [vmem:[%s906_s9] ss:$0 sm:$0xff] }
 0x2ce   :  { %v359_v61 = vsub.f32 %v357_v59, %v358_v60 }
 0x2d0   :  { %v361_v62 = vadd.f32 1e-05, %v359_v61 }
 0x2d2   :  { %637 = vrsqrt.f32 %v361_v62 }
 0x2df   :  { %v638_v0 = vpop.eup %637 }
 0x2e0   :  { %v364_v1 = vmul.f32 %v638_v0, %v363_v63 }
 0x2e2   :  { %v368_v5 = vrot.slane %v364_v1, %v774_v56 }
 0x2e4   :  { %v369_v7 = vmul.f32 %v368_v5, %v360_v4 }
 0x2e6   :  { %v377_v9 = vadd.f32 %v542_v6, %v369_v7 }
 0x2e8   :  { %v378_v11 = vmax.f32 %v377_v9, 0.0 }
 0x2ea   :  { %v380_v13 = vcombine.high %v378_v11, %v378_v11  ;;  %382 = vst.msk [vmem:[#allocation2 + $0x8] sm:$0xf] %vm202_vm6, %v378_v11 }
 0x2ec   :  { %383 = vst.msk [vmem:[#allocation2 + $0x18] sm:$0xf] %vm202_vm6, %v380_v13 }
 0x2f1   :  { %v386_v16 = vld [vmem:[#allocation2 + $0x8] sm:$0xf] }
 0x2f2   :  { %392 = vrot.lane.b32.xlu0 %v386_v16, %s643_s0  ;;  %v388_v18 = vld [vmem:[#allocation2 + $0x9] sm:$0xf] }
 0x2f3   :  { %v387_v17 = vld [vmem:[#allocation2 + $0x18] sm:$0xf]  ;;  %v384_v23 = vld [vmem:[#allocation2 + $0x7] sm:$0xf] }
 0x2f4   :  { %394 = vrot.lane.b32.xlu1 %v387_v17, %s643_s0  ;;  %v389_v19 = vld [vmem:[#allocation2 + $0x19] sm:$0xf] }
 0x2f5   :  { %v385_v24 = vld [vmem:[#allocation2 + $0x17] sm:$0xf] }
 0x2f6   :  { %400 = vrot.lane.b32.xlu0 %v388_v18, %s642_s21 }
 0x2f8   :  { %402 = vrot.lane.b32.xlu1 %v389_v19, %s642_s21 }
 0x364   :  { %v393_v20 = vpop.permute.xlu0 %392 }
 0x365   :  { %v406_v2 = vsel %vm63_vm1, %v384_v23, %v393_v20 }
 0x366   :  { %v395_v21 = vpop.permute.xlu1 %394 }
 0x367   :  { %v407_v25 = vsel %vm63_vm1, %v385_v24, %v395_v21 }
 0x368   :  { %v401_v22 = vpop.permute.xlu0 %400 }
 0x369   :  { %v408_v27 = vsel %vm66_vm2, %v406_v2, %v401_v22 }
 0x36a   :  { %v403_v26 = vpop.permute.xlu1 %402 }
 0x36b   :  { %v409_v28 = vsel %vm66_vm2, %v407_v25, %v403_v26 }
 0x36c   :  { %v418_v29 = vcombine.low %v408_v27, %v409_v28 }
 0x36e   :  { %627 = vmatmul.mubr.msk.f32.vlgmr.msra.gmra.mxu0 %vm69_vm3, %v418_v29 }
 0x42e   :  { %v487_v30 = vpop.f32.mrf.mxu0 }
 0x42f   :  { %v491_v31 = vsel %vm63_vm1, %v487_v30, 0.0  ;;  %v499_v32 = vmul.f32 %v487_v30, %v487_v30 }
 0x430   :  { %v492_v33 = vrot.slane %v491_v31, 4  ;;  %v628_v34 = vpop.f32.mrf.mxu0 }
 0x431   :  { %v500_v35 = vsel %vm63_vm1, %v499_v32, 0.0 }
 0x432   :  { %v493_v36 = vadd.f32 %v492_v33, %v491_v31  ;;  %v501_v37 = vrot.slane %v500_v35, 4 }
 0x434   :  { %v494_v38 = vrot.slane %v493_v36, 2  ;;  %v502_v39 = vadd.f32 %v501_v37, %v500_v35 }
 0x436   :  { %v495_v40 = vadd.f32 %v494_v38, %v493_v36  ;;  %v503_v41 = vrot.slane %v502_v39, 2 }
 0x438   :  { %v496_v42 = vrot.slane %v495_v40, 1  ;;  %v504_v43 = vadd.f32 %v503_v41, %v502_v39 }
 0x43a   :  { %v497_v44 = vadd.f32 %v496_v42, %v495_v40  ;;  %v505_v45 = vrot.slane %v504_v43, 1 }
 0x43c   :  { %v498_v46 = vmul.f32 0.125, %v497_v44  ;;  %v506_v47 = vadd.f32 %v505_v45, %v504_v43 }
 0x43e   :  { %v507_v48 = vmul.f32 0.125, %v506_v47  ;;  %v508_v49 = vmul.f32 %v498_v46, %v498_v46  ;;  %v510_v55 = vsub.f32 %v487_v30, %v498_v46 }
 0x440   :  { %v509_v50 = vsub.f32 %v507_v48, %v508_v49 }
 0x442   :  { %v511_v51 = vadd.f32 1e-05, %v509_v50 }
 0x444   :  { %639 = vrsqrt.f32 %v511_v51 }
 0x451   :  { %v640_v53 = vpop.eup %639 }
 0x452   :  { %v514_v54 = vmul.f32 %v640_v53, %v513_v52 }
 0x454   :  { %v518_v57 = vrot.slane %v514_v54, %v774_v56 }
 0x456   :  { %v519_v59 = vmul.f32 %v518_v57, %v510_v55 }
 0x458   :  { %v527_v60 = vadd.f32 %v544_v58, %v519_v59 }
 0x45a   :  { %v528_v61 = vadd.f32 %v527_v60, %v787_v3 }
 0x45c   :  { %v529_v62 = vmax.f32 %v528_v61, 0.0 }
 0x45e   :  { %v531_v63 = vcombine.high %v529_v62, %v529_v62  ;;  %533 = vst.msk [vmem:[%s907_s10] sm:$0xf] %vm202_vm6, %v529_v62 }
 0x460   :  { %534 = vst.msk [vmem:[%s907_s10 + $0x4] sm:$0xf] %vm202_vm6, %v531_v63 }

// kernel: resnet_forward.4
= control target key start
LH: loop header
LB: loop body
LE: loop exit
PB: predicated region body
PF: predicated region fallthrough
CT: control target
= control target key end

     0   :  { %vm56_vm0 = vcmask 1045504   ;;  %vm43_vm1 = vcmask 1046528   ;;  %s653_s25 = smov 16   ;;  %vm69_vm2 = vcmask 1044480   ;;  %s655_s30 = smov 24   ;;  %vm82_vm3 = vcmask 64512   ;;  %s864_s0 = inlined_call_operand.vmem [shape: f32[2,11,8], index: 0, kind: input, shape index: {}]   ;;  %s865_s1 = inlined_call_operand.vmem [shape: f32[32,8], index: 1, kind: input, shape index: {}]   ;;  %s866_s2 = inlined_call_operand.vmem [shape: f32[1,8], index: 2, kind: input, shape index: {}]   ;;  %s867_s3 = inlined_call_operand.vmem [shape: f32[1,8], index: 3, kind: input, shape index: {}]   ;;  %s868_s4 = inlined_call_operand.vmem [shape: f32[40,8], index: 4, kind: input, shape index: {}]   ;;  %s869_s5 = inlined_call_operand.vmem [shape: f32[1,8], index: 5, kind: input, shape index: {}]   ;;  %s870_s6 = inlined_call_operand.vmem [shape: f32[1,8], index: 6, kind: input, shape index: {}]   ;;  %s871_s7 = inlined_call_operand.vmem [shape: f32[24,8], index: 7, kind: input, shape index: {}]   ;;  %s872_s8 = inlined_call_operand.vmem [shape: f32[1,8], index: 8, kind: input, shape index: {}]   ;;  %s873_s9 = inlined_call_operand.vmem [shape: f32[1,8], index: 9, kind: input, shape index: {}]   ;;  %s874_s10 = inlined_call_operand.vmem [shape: f32[2,8,8], index: 10, kind: output, shape index: {}]  }
   0x1   :  { %v35_v0 = vld [vmem:[%s864_s0] sm:$0xff]  ;;  %v36_v1 = vld [vmem:[%s864_s0 + $0x8] sm:$0x7]  ;;  %v37_v2 = vld [vmem:[%s864_s0 + $0x10] sm:$0xff]  ;;  %vm85_vm4 = vcmask 130048   ;;  %vm88_vm5 = vcmask 195584  }
   0x2   :  { %v57_v3 = vrot.slane %v35_v0, 2  ;;  %v58_v4 = vrot.slane %v36_v1, 2  ;;  %v44_v5 = vrot.slane %v35_v0, 1  ;;  %v45_v6 = vrot.slane %v36_v1, 1  ;;  %v38_v7 = vld [vmem:[%s864_s0 + $0x18] sm:$0x7] }
   0x3   :  { %v60_v8 = vrot.slane %v37_v2, 2  ;;  %v61_v9 = vrot.slane %v38_v7, 2  ;;  %v47_v10 = vrot.slane %v37_v2, 1  ;;  %v48_v11 = vrot.slane %v38_v7, 1  ;;  %v94_v12 = vld [vmem:[%s865_s1 + $0x18] sm:$0xff]  ;;  %v93_v15 = vld [vmem:[%s865_s1 + $0x10] sm:$0xff] }
   0x4   :  { %v59_v13 = vsel %vm56_vm0, %v57_v3, %v58_v4  ;;  %v46_v14 = vsel %vm43_vm1, %v44_v5, %v45_v6  ;;  %609 = vmatprep.subr.mxu0 %v94_v12  ;;  %s654_s0 = smov 8   ;;  %v73_v16 = vrot.slane %v37_v2, 3  ;;  %v74_v17 = vrot.slane %v38_v7, 3  ;;  %v92_v22 = vld [vmem:[%s865_s1 + $0x8] sm:$0xff]  ;;  %v91_v23 = vld [vmem:[%s865_s1] sm:$0xff]  ;;  %s657_s22 = smov 32  }
   0x5   :  { %63 = vrot.lane.b32.xlu1 %v59_v13, %s653_s25  ;;  %50 = vrot.lane.b32.xlu0 %v46_v14, %s654_s0  ;;  %v62_v18 = vsel %vm56_vm0, %v60_v8, %v61_v9  ;;  %v49_v19 = vsel %vm43_vm1, %v47_v10, %v48_v11  ;;  %v70_v20 = vrot.slane %v35_v0, 3  ;;  %v71_v21 = vrot.slane %v36_v1, 3  ;;  %v205_v4 = vld [vmem:[%s866_s2] sm:$0x1] }
   0x6   :  { %610 = vmatpush3.msra.mxu0 %v94_v12  ;;  %v75_v24 = vsel %vm69_vm2, %v73_v16, %v74_v17  ;;  %vm95_vm6 = vcmask 261120   ;;  %vm224_vm7 = vcmask 58368   ;;  %v656_v38 = vmov 0.0   ;;  %v584_v11 = vld [vmem:[%s867_s3] ss:$0 sm:$0xff] }
   0x7   :  { %611 = vmatprep.subr.mxu0 %v93_v15  ;;  %v72_v25 = vsel %vm69_vm2, %v70_v20, %v71_v21  ;;  %226 = vst.msk [vmem:[#allocation2 + $0x1e] sm:$0x3] %vm224_vm7, %v656_v38  ;;  %225 = vst.msk [vmem:[#allocation2 + $0x6] sm:$0x3] %vm224_vm7, %v656_v38  ;;  %v283_v20 = vld [vmem:[%s868_s4 + $0x10] sm:$0xff]  ;;  %v282_v21 = vld [vmem:[%s868_s4 + $0x8] sm:$0xff] }
   0x8   :  { %612 = vmatpush3.msra.mxu0 %v93_v15  ;;  %227 = vst.msk [vmem:[#allocation2 + $0x10] sm:$0x3] %vm224_vm7, %v656_v38  ;;  %228 = vst.msk [vmem:[#allocation2 + $0x28] sm:$0x3] %vm224_vm7, %v656_v38  ;;  %vm286_vm8 = vcmask 326656  }
   0x9   :  { %65 = vrot.lane.b32.xlu1 %v62_v18, %s653_s25  ;;  %52 = vrot.lane.b32.xlu0 %v49_v19, %s654_s0  ;;  %v285_v18 = vld [vmem:[%s868_s4 + $0x20] sm:$0xff]  ;;  %v284_v19 = vld [vmem:[%s868_s4 + $0x18] sm:$0xff] }
   0xa   :  { %613 = vmatprep.subr.mxu0 %v92_v22  ;;  %620 = vmatprep.subr.mxu1 %v285_v18 }
   0xb   :  { %614 = vmatpush3.msra.mxu0 %v92_v22  ;;  %621 = vmatpush3.msra.mxu1 %v285_v18 }
   0xc   :  { %615 = vmatprep.subr.mxu0 %v91_v23  ;;  %622 = vmatprep.subr.mxu1 %v284_v19 }
   0xd   :  { %78 = vrot.lane.b32.xlu1 %v75_v24, %s655_s30  ;;  %76 = vrot.lane.b32.xlu0 %v72_v25, %s655_s30  ;;  %v281_v24 = vld [vmem:[%s868_s4] sm:$0xff] }
   0xe   :  { %616 = vmatpush3.msra.mxu0 %v91_v23  ;;  %623 = vmatpush3.msra.mxu1 %v284_v19 }
   0xf   :  { %624 = vmatprep.subr.mxu1 %v283_v20 }
  0x10   :  { %625 = vmatpush3.msra.mxu1 %v283_v20 }
  0x11   :  { %626 = vmatprep.subr.mxu1 %v282_v21 }
  0x12   :  { %627 = vmatpush3.msra.mxu1 %v282_v21 }
  0x13   :  { %628 = vmatprep.subr.mxu1 %v281_v24 }
  0x14   :  { %629 = vmatpush3.msra.mxu1 %v281_v24 }
  0x77   :  { %v64_v26 = vpop.permute.xlu1 %63  ;;  %v51_v27 = vpop.permute.xlu0 %50 }
  0x78   :  { %v83_v30 = vsel %vm82_vm3, %v35_v0, %v51_v27 }
  0x79   :  { %v86_v35 = vsel %vm85_vm4, %v83_v30, %v64_v26 }
  0x7b   :  { %v66_v28 = vpop.permute.xlu1 %65  ;;  %v53_v29 = vpop.permute.xlu0 %52 }
  0x7c   :  { %v84_v31 = vsel %vm82_vm3, %v37_v2, %v53_v29  ;;  %v207_v2 = vlaneseq }
  0x7d   :  { %v87_v33 = vsel %vm85_vm4, %v84_v31, %v66_v28 }
  0x7e   :  { %v208_v3 = vshrl.u32 %v207_v2, 7 }
  0x7f   :  { %v79_v32 = vpop.permute.xlu1 %78  ;;  %v77_v34 = vpop.permute.xlu0 %76 }
  0x80   :  { %v90_v36 = vsel %vm88_vm5, %v87_v33, %v79_v32  ;;  %v89_v37 = vsel %vm88_vm5, %v86_v35, %v77_v34  ;;  %v762_v5 = vsub.s32 0, %v208_v3 }
  0x81   :  { %617 = vmatprep.mubr.msk.f32.mxu0 %vm95_vm6, %v89_v37 }
  0x82   :  { %618 = vmatmul.mubr.msk.f32.vlgmr.msra.gmra.mxu0 %vm95_vm6, %v90_v36 }
 0x142   :  { %v619_v39 = vpop.f32.mrf.mxu0 }
 0x143   :  { %v188_v40 = vmul.f32 %v619_v39, %v619_v39  ;;  %v178_v42 = vsel %vm82_vm3, %v619_v39, 0.0 }
 0x144   :  { %v168_v41 = vpop.f32.mrf.mxu0 }
 0x145   :  { %v177_v43 = vsel %vm82_vm3, %v168_v41, 0.0  ;;  %v187_v44 = vmul.f32 %v168_v41, %v168_v41  ;;  %v190_v46 = vsel %vm82_vm3, %v188_v40, 0.0 }
 0x146   :  { %v179_v45 = vadd.f32 %v178_v42, %v177_v43 }
 0x147   :  { %v189_v47 = vsel %vm82_vm3, %v187_v44, 0.0 }
 0x148   :  { %v180_v48 = vrot.slane %v179_v45, 4  ;;  %v191_v49 = vadd.f32 %v190_v46, %v189_v47 }
 0x14a   :  { %v181_v50 = vadd.f32 %v180_v48, %v179_v45  ;;  %v192_v51 = vrot.slane %v191_v49, 4 }
 0x14c   :  { %v182_v52 = vrot.slane %v181_v50, 2  ;;  %v193_v53 = vadd.f32 %v192_v51, %v191_v49 }
 0x14e   :  { %v183_v54 = vadd.f32 %v182_v52, %v181_v50  ;;  %v194_v55 = vrot.slane %v193_v53, 2 }
 0x150   :  { %v184_v56 = vrot.slane %v183_v54, 1  ;;  %v195_v57 = vadd.f32 %v194_v55, %v193_v53 }
 0x152   :  { %v185_v58 = vadd.f32 %v184_v56, %v183_v54  ;;  %v196_v59 = vrot.slane %v195_v57, 1 }
 0x154   :  { %v186_v60 = vmul.f32 0.0625, %v185_v58  ;;  %v197_v61 = vadd.f32 %v196_v59, %v195_v57 }
 0x156   :  { %v198_v62 = vmul.f32 0.0625, %v197_v61  ;;  %v199_v63 = vmul.f32 %v186_v60, %v186_v60  ;;  %v201_v8 = vsub.f32 %v168_v41, %v186_v60  ;;  %v202_v9 = vsub.f32 %v619_v39, %v186_v60 }
 0x158   :  { %v200_v0 = vsub.f32 %v198_v62, %v199_v63 }
 0x15a   :  { %v203_v1 = vadd.f32 1e-05, %v200_v0 }
 0x15c   :  { %647 = vrsqrt.f32 %v203_v1 }
 0x169   :  { %v648_v6 = vpop.eup %647 }
 0x16a   :  { %v206_v7 = vmul.f32 %v648_v6, %v205_v4 }
 0x16c   :  { %v210_v10 = vrot.slane %v206_v7, %v762_v5 }
 0x16e   :  { %v211_v12 = vmul.f32 %v210_v10, %v201_v8  ;;  %v212_v13 = vmul.f32 %v210_v10, %v202_v9 }
 0x170   :  { %v768_v14 = vadd.f32 %v584_v11, %v211_v12  ;;  %v770_v15 = vadd.f32 %v584_v11, %v212_v13  ;;  %v396_v13 = vld [vmem:[%s869_s5] sm:$0x1] }
 0x172   :  { %v222_v16 = vmax.f32 %v768_v14, 0.0  ;;  %v223_v17 = vmax.f32 %v770_v15, 0.0 }
 0x174   :  { %229 = vst.msk [vmem:[#allocation2 + $0x8] sm:$0xff] %vm82_vm3, %v222_v16  ;;  %230 = vst.msk [vmem:[#allocation2 + $0x20] sm:$0xff] %vm82_vm3, %v223_v17 }
 0x17b   :  { %v234_v22 = vld [vmem:[#allocation2 + $0x1f] sm:$0xff]  ;;  %v233_v23 = vld [vmem:[#allocation2 + $0x7] sm:$0xff] }
 0x17c   :  { %245 = vrot.lane.b32.xlu1 %v234_v22, %s654_s0  ;;  %243 = vrot.lane.b32.xlu0 %v233_v23, %s654_s0  ;;  %v236_v25 = vld [vmem:[#allocation2 + $0x20] sm:$0xff]  ;;  %v235_v26 = vld [vmem:[#allocation2 + $0x8] sm:$0xff] }
 0x17d   :  { %v238_v27 = vld [vmem:[#allocation2 + $0x21] sm:$0xff]  ;;  %v237_v28 = vld [vmem:[#allocation2 + $0x9] sm:$0xff]  ;;  %v587_v23 = vld [vmem:[%s870_s6] ss:$0 sm:$0xff] }
 0x17e   :  { %v240_v29 = vld [vmem:[#allocation2 + $0x22] sm:$0xff]  ;;  %v239_v30 = vld [vmem:[#allocation2 + $0xa] sm:$0xff] }
 0x17f   :  { %v232_v37 = vld [vmem:[#allocation2 + $0x1e] sm:$0xff]  ;;  %v231_v38 = vld [vmem:[#allocation2 + $0x6] sm:$0xff] }
 0x180   :  { %253 = vrot.lane.b32.xlu1 %v236_v25, %s653_s25  ;;  %251 = vrot.lane.b32.xlu0 %v235_v26, %s653_s25 }
 0x184   :  { %261 = vrot.lane.b32.xlu1 %v238_v27, %s655_s30  ;;  %259 = vrot.lane.b32.xlu0 %v237_v28, %s655_s30  ;;  %v445_v28 = vld [vmem:[%s871_s7 + $0x10] sm:$0xff] }
 0x185   :  { %633 = vmatprep.subr.mxu0 %v445_v28 }
 0x186   :  { %634 = vmatpush3.msra.mxu0 %v445_v28 }
 0x188   :  { %269 = vrot.lane.b32.xlu1 %v240_v29, %s657_s22  ;;  %267 = vrot.lane.b32.xlu0 %v239_v30, %s657_s22  ;;  %v444_v29 = vld [vmem:[%s871_s7 + $0x8] sm:$0xff] }
 0x189   :  { %635 = vmatprep.subr.mxu0 %v444_v29 }
 0x18a   :  { %636 = vmatpush3.msra.mxu0 %v444_v29 }
 0x1ee   :  { %v246_v31 = vpop.permute.xlu1 %245  ;;  %v244_v32 = vpop.permute.xlu0 %243 }
 0x1ef   :  { %v274_v39 = vsel %vm82_vm3, %v232_v37, %v246_v31  ;;  %v273_v40 = vsel %vm82_vm3, %v231_v38, %v244_v32  ;;  %v443_v32 = vld [vmem:[%s871_s7] sm:$0xff] }
 0x1f0   :  { %637 = vmatprep.subr.mxu0 %v443_v32 }
 0x1f1   :  { %638 = vmatpush3.msra.mxu0 %v443_v32 }
 0x1f2   :  { %v254_v33 = vpop.permute.xlu1 %253  ;;  %v252_v34 = vpop.permute.xlu0 %251 }
 0x1f3   :  { %v276_v41 = vsel %vm85_vm4, %v274_v39, %v254_v33  ;;  %v275_v42 = vsel %vm85_vm4, %v273_v40, %v252_v34 }
 0x1f6   :  { %v262_v35 = vpop.permute.xlu1 %261  ;;  %v260_v36 = vpop.permute.xlu0 %259 }
 0x1f7   :  { %v278_v43 = vsel %vm88_vm5, %v276_v41, %v262_v35  ;;  %v277_v44 = vsel %vm88_vm5, %v275_v42, %v260_v36 }
 0x1fa   :  { %v270_v45 = vpop.permute.xlu1 %269  ;;  %v268_v46 = vpop.permute.xlu0 %267 }
 0x1fb   :  { %v280_v47 = vsel %vm95_vm6, %v278_v43, %v270_v45  ;;  %v279_v48 = vsel %vm95_vm6, %v277_v44, %v268_v46 }
 0x1fc   :  { %630 = vmatprep.mubr.msk.f32.mxu1 %vm286_vm8, %v279_v48 }
 0x1fd   :  { %631 = vmatmul.mubr.msk.f32.vlgmr.msra.gmra.mxu1 %vm286_vm8, %v280_v47 }
 0x2bd   :  { %v632_v49 = vpop.f32.mrf.mxu1 }
 0x2be   :  { %v379_v50 = vmul.f32 %v632_v49, %v632_v49  ;;  %v369_v52 = vsel %vm82_vm3, %v632_v49, 0.0 }
 0x2bf   :  { %v359_v51 = vpop.f32.mrf.mxu1 }
 0x2c0   :  { %v368_v53 = vsel %vm82_vm3, %v359_v51, 0.0  ;;  %v378_v54 = vmul.f32 %v359_v51, %v359_v51  ;;  %v381_v56 = vsel %vm82_vm3, %v379_v50, 0.0 }
 0x2c1   :  { %v370_v55 = vadd.f32 %v369_v52, %v368_v53 }
 0x2c2   :  { %v380_v57 = vsel %vm82_vm3, %v378_v54, 0.0 }
 0x2c3   :  { %v371_v58 = vrot.slane %v370_v55, 4  ;;  %v382_v59 = vadd.f32 %v381_v56, %v380_v57 }
 0x2c5   :  { %v372_v60 = vadd.f32 %v371_v58, %v370_v55  ;;  %v383_v61 = vrot.slane %v382_v59, 4 }
 0x2c7   :  { %v373_v62 = vrot.slane %v372_v60, 2  ;;  %v384_v63 = vadd.f32 %v383_v61, %v382_v59 }
 0x2c9   :  { %v374_v0 = vadd.f32 %v373_v62, %v372_v60  ;;  %v385_v1 = vrot.slane %v384_v63, 2 }
 0x2cb   :  { %v375_v2 = vrot.slane %v374_v0, 1  ;;  %v386_v3 = vadd.f32 %v385_v1, %v384_v63 }
 0x2cd   :  { %v376_v4 = vadd.f32 %v375_v2, %v374_v0  ;;  %v387_v6 = vrot.slane %v386_v3, 1 }
 0x2cf   :  { %v377_v7 = vmul.f32 0.0625, %v376_v4  ;;  %v388_v8 = vadd.f32 %v387_v6, %v386_v3 }
 0x2d1   :  { %v389_v9 = vmul.f32 0.0625, %v388_v8  ;;  %v390_v10 = vmul.f32 %v377_v7, %v377_v7  ;;  %v392_v20 = vsub.f32 %v359_v51, %v377_v7  ;;  %v393_v21 = vsub.f32 %v632_v49, %v377_v7 }
 0x2d3   :  { %v391_v11 = vsub.f32 %v389_v9, %v390_v10 }
 0x2d5   :  { %v394_v12 = vadd.f32 1e-05, %v391_v11  ;;  %v555_v11 = vld [vmem:[%s872_s8] sm:$0x1] }
 0x2d7   :  { %649 = vrsqrt.f32 %v394_v12 }
 0x2e4   :  { %v650_v18 = vpop.eup %649 }
 0x2e5   :  { %v397_v19 = vmul.f32 %v650_v18, %v396_v13 }
 0x2e7   :  { %v401_v22 = vrot.slane %v397_v19, %v762_v5 }
 0x2e9   :  { %v402_v24 = vmul.f32 %v401_v22, %v392_v20  ;;  %v403_v25 = vmul.f32 %v401_v22, %v393_v21  ;;  %v590_v21 = vld [vmem:[%s873_s9] ss:$0 sm:$0xff] }
 0x2eb   :  { %v411_v26 = vadd.f32 %v587_v23, %v402_v24  ;;  %v412_v27 = vadd.f32 %v587_v23, %v403_v25 }
 0x2ed   :  { %v413_v30 = vmax.f32 %v411_v26, 0.0  ;;  %v414_v31 = vmax.f32 %v412_v27, 0.0 }
 0x2ef   :  { %415 = vst.msk [vmem:[#allocation2 + $0x8] sm:$0xff] %vm82_vm3, %v413_v30  ;;  %416 = vst.msk [vmem:[#allocation2 + $0x20] sm:$0xff] %vm82_vm3, %v414_v31 }
 0x2f6   :  { %v420_v33 = vld [vmem:[#allocation2 + $0x20] sm:$0xff]  ;;  %v419_v34 = vld [vmem:[#allocation2 + $0x8] sm:$0xff] }
 0x2f7   :  { %427 = vrot.lane.b32.xlu1 %v420_v33, %s654_s0  ;;  %425 = vrot.lane.b32.xlu0 %v419_v34, %s654_s0  ;;  %v422_v35 = vld [vmem:[#allocation2 + $0x21] sm:$0xff]  ;;  %v421_v36 = vld [vmem:[#allocation2 + $0x9] sm:$0xff] }
 0x2f8   :  { %v418_v39 = vld [vmem:[#allocation2 + $0x1f] sm:$0xff]  ;;  %v417_v40 = vld [vmem:[#allocation2 + $0x7] sm:$0xff] }
 0x2fb   :  { %435 = vrot.lane.b32.xlu1 %v422_v35, %s653_s25  ;;  %433 = vrot.lane.b32.xlu0 %v421_v36, %s653_s25 }
 0x369   :  { %v428_v37 = vpop.permute.xlu1 %427  ;;  %v426_v38 = vpop.permute.xlu0 %425 }
 0x36a   :  { %v440_v41 = vsel %vm82_vm3, %v418_v39, %v428_v37  ;;  %v439_v42 = vsel %vm82_vm3, %v417_v40, %v426_v38 }
 0x36d   :  { %v436_v43 = vpop.permute.xlu1 %435  ;;  %v434_v44 = vpop.permute.xlu0 %433 }
 0x36e   :  { %v442_v45 = vsel %vm85_vm4, %v440_v41, %v436_v43  ;;  %v441_v46 = vsel %vm85_vm4, %v439_v42, %v434_v44 }
 0x36f   :  { %639 = vmatprep.mubr.msk.f32.mxu0 %vm88_vm5, %v441_v46 }
 0x370   :  { %640 = vmatmul.mubr.msk.f32.vlgmr.msra.gmra.mxu0 %vm88_vm5, %v442_v45 }
 0x430   :  { %v641_v47 = vpop.f32.mrf.mxu0 }
 0x431   :  { %v538_v48 = vmul.f32 %v641_v47, %v641_v47  ;;  %v528_v50 = vsel %vm82_vm3, %v641_v47, 0.0 }
 0x432   :  { %v518_v49 = vpop.f32.mrf.mxu0 }
 0x433   :  { %v527_v51 = vsel %vm82_vm3, %v518_v49, 0.0  ;;  %v537_v52 = vmul.f32 %v518_v49, %v518_v49  ;;  %v540_v54 = vsel %vm82_vm3, %v538_v48, 0.0 }
 0x434   :  { %v529_v53 = vadd.f32 %v528_v50, %v527_v51 }
 0x435   :  { %v539_v55 = vsel %vm82_vm3, %v537_v52, 0.0 }
 0x436   :  { %v530_v56 = vrot.slane %v529_v53, 4  ;;  %v541_v57 = vadd.f32 %v540_v54, %v539_v55 }
 0x438   :  { %v531_v58 = vadd.f32 %v530_v56, %v529_v53  ;;  %v542_v59 = vrot.slane %v541_v57, 4 }
 0x43a   :  { %v532_v60 = vrot.slane %v531_v58, 2  ;;  %v543_v61 = vadd.f32 %v542_v59, %v541_v57 }
 0x43c   :  { %v533_v62 = vadd.f32 %v532_v60, %v531_v58  ;;  %v544_v63 = vrot.slane %v543_v61, 2 }
 0x43e   :  { %v534_v0 = vrot.slane %v533_v62, 1  ;;  %v545_v1 = vadd.f32 %v544_v63, %v543_v61 }
 0x440   :  { %v535_v2 = vadd.f32 %v534_v0, %v533_v62  ;;  %v546_v3 = vrot.slane %v545_v1, 1 }
 0x442   :  { %v536_v4 = vmul.f32 0.0625, %v535_v2  ;;  %v547_v6 = vadd.f32 %v546_v3, %v545_v1 }
 0x444   :  { %v548_v7 = vmul.f32 0.0625, %v547_v6  ;;  %v549_v8 = vmul.f32 %v536_v4, %v536_v4  ;;  %v551_v18 = vsub.f32 %v518_v49, %v536_v4  ;;  %v552_v19 = vsub.f32 %v641_v47, %v536_v4 }
 0x446   :  { %v550_v9 = vsub.f32 %v548_v7, %v549_v8 }
 0x448   :  { %v553_v10 = vadd.f32 1e-05, %v550_v9 }
 0x44a   :  { %651 = vrsqrt.f32 %v553_v10 }
 0x457   :  { %v652_v12 = vpop.eup %651 }
 0x458   :  { %v556_v13 = vmul.f32 %v652_v12, %v555_v11 }
 0x45a   :  { %v560_v20 = vrot.slane %v556_v13, %v762_v5 }
 0x45c   :  { %v561_v22 = vmul.f32 %v560_v20, %v551_v18  ;;  %v562_v23 = vmul.f32 %v560_v20, %v552_v19 }
 0x45e   :  { %v570_v24 = vadd.f32 %v590_v21, %v561_v22  ;;  %v571_v25 = vadd.f32 %v590_v21, %v562_v23 }
 0x460   :  { %v572_v26 = vadd.f32 %v570_v24, %v222_v16  ;;  %v573_v27 = vadd.f32 %v571_v25, %v223_v17 }
 0x462   :  { %v574_v28 = vmax.f32 %v572_v26, 0.0  ;;  %v575_v29 = vmax.f32 %v573_v27, 0.0 }
 0x464   :  { %576 = vst.msk [vmem:[%s874_s10] sm:$0xff] %vm82_vm3, %v574_v28  ;;  %577 = vst.msk [vmem:[%s874_s10 + $0x8] sm:$0xff] %vm82_vm3, %v575_v29 }

// kernel: resnet_forward.7
= control target key start
LH: loop header
LB: loop body
LE: loop exit
PB: predicated region body
PF: predicated region fallthrough
CT: control target
= control target key end

     0   :  { %v671_v4 = vmov 0.0   ;;  %vm66_vm0 = vcmask 261120   ;;  %s1009_s0 = inlined_call_operand.vmem [shape: f32[2,32], index: 0, kind: input, shape index: {}]   ;;  %s1010_s1 = inlined_call_operand.vmem [shape: f32[32,512], index: 1, kind: input, shape index: {}]   ;;  %s1011_s2 = inlined_call_operand.vmem [shape: f32[1,512], index: 2, kind: input, shape index: {}]   ;;  %s1012_s3 = inlined_call_operand.vmem [shape: f32[512,64], index: 3, kind: input, shape index: {}]   ;;  %s1013_s4 = inlined_call_operand.vmem [shape: f32[1,64], index: 4, kind: input, shape index: {}]   ;;  %s1014_s5 = inlined_call_operand.vmem [shape: f32[64,2], index: 5, kind: input, shape index: {}]   ;;  %s1015_s6 = inlined_call_operand.vmem [shape: f32[1,2], index: 6, kind: input, shape index: {}]   ;;  %s1016_s7 = inlined_call_operand.hbm [shape: f32[2,2], index: 7, kind: output, shape index: {}]  }
   0x1   :  { %v41_v0 = vld [vmem:[%s1010_s1 + $0x68] sm:$0xff]  ;;  %v40_v1 = vld [vmem:[%s1010_s1 + $0x60] sm:$0xff]  ;;  %134 = vmatprep.mubr.f32.mxu1 %v671_v4  ;;  %v243_v10 = vld [vmem:[%s1012_s3 + $0xf8] sm:$0xff] }
   0x2   :  { %v37_v2 = vld [vmem:[%s1010_s1 + $0x48] sm:$0xff]  ;;  %94 = vmatprep.subr.mxu1 %v41_v0  ;;  %v36_v3 = vld [vmem:[%s1010_s1 + $0x40] sm:$0xff]  ;;  %v43_v11 = vld [vmem:[%s1010_s1 + $0x78] sm:$0xff]  ;;  %544 = vmatprep.subr.mxu0 %v243_v10 }
   0x3   :  { %95 = vmatpush1.msra.mxu1 %v40_v1  ;;  %v33_v5 = vld [vmem:[%s1010_s1 + $0x28] sm:$0xff]  ;;  %v32_v6 = vld [vmem:[%s1010_s1 + $0x20] sm:$0xff]  ;;  %v227_v12 = vld [vmem:[%s1012_s3 + $0x78] sm:$0xff] }
   0x4   :  { %96 = vmatprep.subr.mxu1 %v37_v2  ;;  %v29_v7 = vld [vmem:[%s1010_s1 + $0x8] sm:$0xff]  ;;  %v28_v8 = vld [vmem:[%s1010_s1] sm:$0xff]  ;;  %v242_v13 = vld [vmem:[%s1012_s3 + $0xf0] sm:$0xff]  ;;  %545 = vmatpush3.msra.mxu0 %v227_v12 }
   0x5   :  { %97 = vmatpush1.msra.mxu1 %v36_v3  ;;  %v27_v9 = vld [vmem:[%s1009_s0] sm:$0x3]  ;;  %v42_v14 = vld [vmem:[%s1010_s1 + $0x70] sm:$0xff]  ;;  %v39_v15 = vld [vmem:[%s1010_s1 + $0x58] sm:$0xff]  ;;  %546 = vmatprep.subr.mxu0 %v242_v13 }
   0x6   :  { %98 = vmatprep.subr.mxu1 %v33_v5  ;;  %v226_v16 = vld [vmem:[%s1012_s3 + $0x70] sm:$0xff]  ;;  %v241_v18 = vld [vmem:[%s1012_s3 + $0xe8] sm:$0xff]  ;;  %v35_v19 = vld [vmem:[%s1010_s1 + $0x38] sm:$0xff] }
   0x7   :  { %99 = vmatpush1.msra.mxu1 %v32_v6  ;;  %v38_v17 = vld [vmem:[%s1010_s1 + $0x50] sm:$0xff]  ;;  %v225_v20 = vld [vmem:[%s1012_s3 + $0x68] sm:$0xff]  ;;  %547 = vmatpush3.msra.mxu0 %v226_v16  ;;  %v240_v22 = vld [vmem:[%s1012_s3 + $0xe0] sm:$0xff] }
   0x8   :  { %100 = vmatprep.subr.mxu1 %v29_v7  ;;  %v34_v21 = vld [vmem:[%s1010_s1 + $0x30] sm:$0xff]  ;;  %v31_v23 = vld [vmem:[%s1010_s1 + $0x18] sm:$0xff]  ;;  %548 = vmatprep.subr.mxu0 %v241_v18  ;;  %v224_v24 = vld [vmem:[%s1012_s3 + $0x60] sm:$0xff] }
   0x9   :  { %101 = vmatpush1.msra.mxu1 %v28_v8  ;;  %v30_v25 = vld [vmem:[%s1010_s1 + $0x10] sm:$0xff]  ;;  %549 = vmatpush3.msra.mxu0 %v225_v20  ;;  %v239_v26 = vld [vmem:[%s1012_s3 + $0xd8] sm:$0xff]  ;;  %v237_v34 = vld [vmem:[%s1012_s3 + $0xc8] sm:$0xff] }
   0xa   :  { %539 = vmatmul.mubr.msk.f32.vlgmr.msra.gmra.mxu1 %vm66_vm0, %v27_v9  ;;  %165 = vmatprep.subr.mxu1 %v43_v11  ;;  %v275_v27 = vld [vmem:[%s1012_s3 + $0x1f8] sm:$0xff]  ;;  %v238_v30 = vld [vmem:[%s1012_s3 + $0xd0] sm:$0xff]  ;;  %v273_v35 = vld [vmem:[%s1012_s3 + $0x1e8] sm:$0xff] }
   0xb   :  { %166 = vmatpush1.msra.mxu1 %v42_v14  ;;  %205 = vmatprep.mubr.f32.mxu1 %v671_v4  ;;  %v223_v28 = vld [vmem:[%s1012_s3 + $0x58] sm:$0xff]  ;;  %v274_v31 = vld [vmem:[%s1012_s3 + $0x1f0] sm:$0xff]  ;;  %v221_v36 = vld [vmem:[%s1012_s3 + $0x48] sm:$0xff] }
   0xc   :  { %167 = vmatprep.subr.mxu1 %v39_v15  ;;  %550 = vmatprep.subr.mxu0 %v240_v22  ;;  %v259_v29 = vld [vmem:[%s1012_s3 + $0x178] sm:$0xff]  ;;  %v222_v32 = vld [vmem:[%s1012_s3 + $0x50] sm:$0xff]  ;;  %v257_v37 = vld [vmem:[%s1012_s3 + $0x168] sm:$0xff] }
   0xd   :  { %168 = vmatpush1.msra.mxu1 %v38_v17  ;;  %551 = vmatpush3.msra.mxu0 %v224_v24  ;;  %v258_v33 = vld [vmem:[%s1012_s3 + $0x170] sm:$0xff]  ;;  %v236_v38 = vld [vmem:[%s1012_s3 + $0xc0] sm:$0xff] }
   0xe   :  { %169 = vmatprep.subr.mxu1 %v35_v19  ;;  %552 = vmatprep.subr.mxu0 %v239_v26  ;;  %v272_v39 = vld [vmem:[%s1012_s3 + $0x1e0] sm:$0xff] }
   0xf   :  { %170 = vmatpush1.msra.mxu1 %v34_v21  ;;  %553 = vmatpush3.msra.mxu0 %v223_v28 }
  0x10   :  { %171 = vmatprep.subr.mxu1 %v31_v23  ;;  %554 = vmatprep.subr.mxu0 %v238_v30 }
  0x11   :  { %172 = vmatpush1.msra.mxu1 %v30_v25  ;;  %555 = vmatpush3.msra.mxu0 %v222_v32 }
  0x12   :  { %540 = vmatmul.mubr.msk.f32.vlgmr.msra.gmra.mxu1 %vm66_vm0, %v27_v9  ;;  %579 = vmatprep.subr.mxu1 %v275_v27 }
  0x13   :  { %580 = vmatpush3.msra.mxu1 %v259_v29 }
  0x14   :  { %581 = vmatprep.subr.mxu1 %v274_v31 }
  0x15   :  { %582 = vmatpush3.msra.mxu1 %v258_v33 }
  0x16   :  { %12 = vsyncpa [#allocation3], 0  ;;  %556 = vmatprep.subr.mxu0 %v237_v34  ;;  %583 = vmatprep.subr.mxu1 %v273_v35  ;;  %v220_v40 = vld [vmem:[%s1012_s3 + $0x40] sm:$0xff]  ;;  %v235_v42 = vld [vmem:[%s1012_s3 + $0xb8] sm:$0xff]  ;;  %v46_v19 = vlaneseq  ;;  %vm672_vm1 = vmmov 0   ;;  %vm438_vm2 = vcmask 523264  }
  0x17   :  { %v256_v41 = vld [vmem:[%s1012_s3 + $0x160] sm:$0xff]  ;;  %557 = vmatpush3.msra.mxu0 %v221_v36  ;;  %584 = vmatpush3.msra.mxu1 %v257_v37  ;;  %v271_v43 = vld [vmem:[%s1012_s3 + $0x1d8] sm:$0xff]  ;;  %v234_v46 = vld [vmem:[%s1012_s3 + $0xb0] sm:$0xff]  ;;  %vm512_vm3 = vcmask 9216  }
  0x18   :  { %558 = vmatprep.subr.mxu0 %v236_v38  ;;  %585 = vmatprep.subr.mxu1 %v272_v39  ;;  %v219_v44 = vld [vmem:[%s1012_s3 + $0x38] sm:$0xff]  ;;  %v270_v47 = vld [vmem:[%s1012_s3 + $0x1d0] sm:$0xff]  ;;  %v233_v50 = vld [vmem:[%s1012_s3 + $0xa8] sm:$0xff]  ;;  %v47_v20 = vshrl.u32 %v46_v19, 7 }
  0x19   :  { %v255_v45 = vld [vmem:[%s1012_s3 + $0x158] sm:$0xff]  ;;  %559 = vmatpush3.msra.mxu0 %v220_v40  ;;  %586 = vmatpush3.msra.mxu1 %v256_v41  ;;  %v218_v48 = vld [vmem:[%s1012_s3 + $0x30] sm:$0xff]  ;;  %v269_v51 = vld [vmem:[%s1012_s3 + $0x1c8] sm:$0xff] }
  0x1a   :  { %560 = vmatprep.subr.mxu0 %v235_v42  ;;  %587 = vmatprep.subr.mxu1 %v271_v43  ;;  %v254_v49 = vld [vmem:[%s1012_s3 + $0x150] sm:$0xff]  ;;  %v217_v52 = vld [vmem:[%s1012_s3 + $0x28] sm:$0xff]  ;;  %v232_v54 = vld [vmem:[%s1012_s3 + $0xa0] sm:$0xff]  ;;  %v52_v21 = vsub.s32 1, %v47_v20  ;;  %v48_v23 = vsub.s32 0, %v47_v20  ;;  %v60_v29 = vsub.s32 3, %v47_v20 }
  0x1b   :  { %561 = vmatpush3.msra.mxu0 %v219_v44  ;;  %588 = vmatpush3.msra.mxu1 %v255_v45  ;;  %v253_v53 = vld [vmem:[%s1012_s3 + $0x148] sm:$0xff]  ;;  %v268_v55 = vld [vmem:[%s1012_s3 + $0x1c0] sm:$0xff]  ;;  %v231_v58 = vld [vmem:[%s1012_s3 + $0x98] sm:$0xff]  ;;  %v56_v31 = vsub.s32 2, %v47_v20 }
  0x1c   :  { %562 = vmatprep.subr.mxu0 %v234_v46  ;;  %589 = vmatprep.subr.mxu1 %v270_v47  ;;  %v216_v56 = vld [vmem:[%s1012_s3 + $0x20] sm:$0xff]  ;;  %v267_v59 = vld [vmem:[%s1012_s3 + $0x1b8] sm:$0xff]  ;;  %v230_v62 = vld [vmem:[%s1012_s3 + $0x90] sm:$0xff] }
  0x1d   :  { %563 = vmatpush3.msra.mxu0 %v218_v48  ;;  %590 = vmatpush3.msra.mxu1 %v254_v49  ;;  %v252_v57 = vld [vmem:[%s1012_s3 + $0x140] sm:$0xff]  ;;  %v215_v60 = vld [vmem:[%s1012_s3 + $0x18] sm:$0xff]  ;;  %v266_v63 = vld [vmem:[%s1012_s3 + $0x1b0] sm:$0xff] }
  0x1e   :  { %564 = vmatprep.subr.mxu0 %v233_v50  ;;  %591 = vmatprep.subr.mxu1 %v269_v51  ;;  %v251_v61 = vld [vmem:[%s1012_s3 + $0x138] sm:$0xff]  ;;  %v214_v0 = vld [vmem:[%s1012_s3 + $0x10] sm:$0xff]  ;;  %v229_v2 = vld [vmem:[%s1012_s3 + $0x88] sm:$0xff] }
  0x1f   :  { %565 = vmatpush3.msra.mxu0 %v217_v52  ;;  %592 = vmatpush3.msra.mxu1 %v253_v53  ;;  %v250_v1 = vld [vmem:[%s1012_s3 + $0x130] sm:$0xff]  ;;  %v265_v3 = vld [vmem:[%s1012_s3 + $0x1a8] sm:$0xff]  ;;  %v228_v7 = vld [vmem:[%s1012_s3 + $0x80] sm:$0xff] }
  0x20   :  { %566 = vmatprep.subr.mxu0 %v232_v54  ;;  %593 = vmatprep.subr.mxu1 %v268_v55  ;;  %v213_v5 = vld [vmem:[%s1012_s3 + $0x8] sm:$0xff]  ;;  %v264_v8 = vld [vmem:[%s1012_s3 + $0x1a0] sm:$0xff]  ;;  %v263_v11 = vld [vmem:[%s1012_s3 + $0x198] sm:$0xff] }
  0x21   :  { %567 = vmatpush3.msra.mxu0 %v216_v56  ;;  %594 = vmatpush3.msra.mxu1 %v252_v57  ;;  %v249_v6 = vld [vmem:[%s1012_s3 + $0x128] sm:$0xff]  ;;  %v212_v9 = vld [vmem:[%s1012_s3] sm:$0xff]  ;;  %v247_v12 = vld [vmem:[%s1012_s3 + $0x118] sm:$0xff] }
  0x22   :  { %568 = vmatprep.subr.mxu0 %v231_v58  ;;  %595 = vmatprep.subr.mxu1 %v267_v59  ;;  %v248_v10 = vld [vmem:[%s1012_s3 + $0x120] sm:$0xff]  ;;  %v262_v13 = vld [vmem:[%s1012_s3 + $0x190] sm:$0xff]  ;;  %v261_v15 = vld [vmem:[%s1012_s3 + $0x188] sm:$0xff] }
  0x23   :  { %569 = vmatpush3.msra.mxu0 %v215_v60  ;;  %596 = vmatpush3.msra.mxu1 %v251_v61  ;;  %v246_v14 = vld [vmem:[%s1012_s3 + $0x110] sm:$0xff]  ;;  %v245_v16 = vld [vmem:[%s1012_s3 + $0x108] sm:$0xff]  ;;  %v260_v17 = vld [vmem:[%s1012_s3 + $0x180] sm:$0xff] }
  0x24   :  { %570 = vmatprep.subr.mxu0 %v230_v62  ;;  %597 = vmatprep.subr.mxu1 %v266_v63  ;;  %v244_v18 = vld [vmem:[%s1012_s3 + $0x100] sm:$0xff]  ;;  %v430_v38 = vld [vmem:[%s1014_s5 + $0x38] sm:$0xff]  ;;  %v429_v39 = vld [vmem:[%s1014_s5 + $0x30] sm:$0xff] }
  0x25   :  { %571 = vmatpush3.msra.mxu0 %v214_v0  ;;  %598 = vmatpush3.msra.mxu1 %v250_v1  ;;  %v44_v22 = vld [vmem:[%s1011_s2] sm:$0xf]  ;;  %v428_v40 = vld [vmem:[%s1014_s5 + $0x28] sm:$0xff]  ;;  %v426_v42 = vld [vmem:[%s1014_s5 + $0x18] sm:$0xff] }
  0x26   :  { %572 = vmatprep.subr.mxu0 %v229_v2  ;;  %599 = vmatprep.subr.mxu1 %v265_v3  ;;  %v53_v24 = vrot.slane %v44_v22, %v52_v21  ;;  %v49_v25 = vrot.slane %v44_v22, %v48_v23  ;;  %v61_v32 = vrot.slane %v44_v22, %v60_v29  ;;  %v427_v41 = vld [vmem:[%s1014_s5 + $0x20] sm:$0xff]  ;;  %v425_v43 = vld [vmem:[%s1014_s5 + $0x10] sm:$0xff]  ;;  %v424_v44 = vld [vmem:[%s1014_s5 + $0x8] sm:$0xff] }
  0x27   :  { %573 = vmatpush3.msra.mxu0 %v213_v5  ;;  %600 = vmatpush3.msra.mxu1 %v249_v6  ;;  %v57_v33 = vrot.slane %v44_v22, %v56_v31  ;;  %v423_v45 = vld [vmem:[%s1014_s5] sm:$0xff] }
  0x28   :  { %574 = vmatprep.subr.mxu0 %v228_v7  ;;  %601 = vmatprep.subr.mxu1 %v264_v8  ;;  %v541_v49 = vld [vmem:[%s1013_s4] ss:$0 sm:$0xff]  ;;  %s673_s4 = smov [#allocation2]  }
  0x29   :  { %575 = vmatpush3.msra.mxu0 %v212_v9  ;;  %602 = vmatpush3.msra.mxu1 %v248_v10  ;;  %v542_v55 = vld [vmem:[%s1015_s6] ss:$0 sm:$0xff]  ;;  %s531_s9 = sshll.u32 %s673_s4, 4  ;;  %s532_s9 = int_to_ptr.vmem [resolvable:$true] %s531_s9 }
  0x2a   :  { %603 = vmatprep.subr.mxu1 %v263_v11  ;;  %623 = vmatprep.subr.mxu0 %v671_v4  ;;  %s649_s6 = scalar_lea.vmem %s532_s9, 32  ;;  %p654_p1 = scmp.lt.s32.totalorder %s532_s9, %s532_s9 }
  0x2b   :  { %604 = vmatpush3.msra.mxu1 %v247_v12  ;;  %p650_p0 = scmp.ne.s32.totalorder %s532_s9, %s649_s6  ;;  %p655_p2 = scmp.lt.s32.totalorder %s649_s6, %s649_s6 }
  0x2c   :  { %605 = vmatprep.subr.mxu1 %v262_v13 }
  0x2d   :  { %606 = vmatpush3.msra.mxu1 %v246_v14  ;;  %p656_p3 = por %p655_p2, %p654_p1 }
  0x2e   :  { %607 = vmatprep.subr.mxu1 %v261_v15 }
  0x2f   :  { %608 = vmatpush3.msra.mxu1 %v245_v16  ;;  %p657_p4 = pnand %p656_p3, %p650_p0 }
  0x30   :  { %609 = vmatprep.subr.mxu1 %v260_v17 }
  0x31   :  { %610 = vmatpush3.msra.mxu1 %v244_v18 }
  0xca   :  { %v136_v26 = vpop.f32.mrf.mxu1 }
  0xcb   :  { %v137_v30 = vadd.f32 %v136_v26, %v49_v25 }
  0xcc   :  { %v138_v27 = vpop.f32.mrf.mxu1 }
  0xcd   :  { %v139_v28 = vadd.f32 %v138_v27, %v53_v24 }
  0xcf   :  { %347 = vmatprep.mubr.f32.mxu0 %v139_v28 }
  0xd0   :  { %348 = vmatmul.mubr.f32.vlgmr.msra.gmra.mxu0 %v137_v30 }
  0xd1   :  { %624 = vmatpush3.msra.mxu0 %v430_v38  ;;  %639 = vmatprep.mubr.msk.f32.mxu0 %vm672_vm1, %v671_v4 }
  0xd2   :  { %v207_v34 = vpop.f32.mrf.mxu1  ;;  %625 = vmatprep.subr.mxu0 %v671_v4 }
  0xd3   :  { %v208_v37 = vadd.f32 %v207_v34, %v57_v33  ;;  %626 = vmatpush3.msra.mxu0 %v429_v39 }
  0xd4   :  { %v209_v35 = vpop.f32.mrf.mxu1  ;;  %627 = vmatprep.subr.mxu0 %v671_v4 }
  0xd5   :  { %v210_v36 = vadd.f32 %v209_v35, %v61_v32  ;;  %628 = vmatpush3.msra.mxu0 %v428_v40 }
  0xd6   :  { %629 = vmatprep.subr.mxu0 %v671_v4 }
  0xd7   :  { %417 = vmatprep.mubr.f32.mxu1 %v210_v36  ;;  %630 = vmatpush3.msra.mxu0 %v427_v41 }
  0xd8   :  { %418 = vmatmul.mubr.f32.vlgmr.msra.gmra.mxu1 %v208_v37  ;;  %631 = vmatprep.subr.mxu0 %v671_v4 }
  0xd9   :  { %632 = vmatpush3.msra.mxu0 %v426_v42 }
  0xda   :  { %633 = vmatprep.subr.mxu0 %v671_v4 }
  0xdb   :  { %634 = vmatpush3.msra.mxu0 %v425_v43 }
  0xdc   :  { %635 = vmatprep.subr.mxu0 %v671_v4 }
  0xdd   :  { %636 = vmatpush3.msra.mxu0 %v424_v44 }
  0xde   :  { %637 = vmatprep.subr.mxu0 %v671_v4 }
  0xdf   :  { %638 = vmatpush3.msra.mxu0 %v423_v45 }
 0x190   :  { %v576_v46 = vpop.f32.mrf.mxu0 }
 0x192   :  { %v577_v47 = vpop.f32.mrf.mxu0 }
 0x193   :  { %v578_v48 = vadd.f32 %v577_v47, %v576_v46 }
 0x195   :  { %v350_v52 = vadd.f32 %v578_v48, %v541_v49 }
 0x198   :  { %v611_v50 = vpop.f32.mrf.mxu1 }
 0x19a   :  { %v612_v51 = vpop.f32.mrf.mxu1 }
 0x19b   :  { %v613_v53 = vadd.f32 %v612_v51, %v611_v50 }
 0x19d   :  { %v420_v54 = vadd.f32 %v613_v53, %v350_v52 }
 0x19f   :  { %640 = vmatmul.mubr.msk.f32.vlgmr.msra.gmra.mxu0 %vm438_vm2, %v420_v54 }
 0x25f   :  { %v508_v56 = vpop.f32.mrf.mxu0 }
 0x260   :  { %v509_v4 = vadd.f32 %v542_v55, %v508_v56 }
 0x261   :  { %v641_v57 = vpop.f32.mrf.mxu0 }
 0x262   :  { %v513_v58 = vsel %vm512_vm3, %v509_v4, -inf }
 0x263   :  { %514 = vmax.xlane.f32.xlu0 %v513_v58 }
 0x2ec   :  { %v515_v59 = vpop.xlane.xlu0 %514 }
 0x2ed   :  { %v516_v60 = vsub.f32 %v509_v4, %v515_v59 }
 0x2ef   :  { %v517_v61 = vmul.f32 1.442695, %v516_v60 }
 0x2f1   :  { %645 = vpow2.f32 %v517_v61 }
 0x2fe   :  { %v646_v62 = vpop.eup %645 }
 0x2ff   :  { %v519_v63 = vsel %vm512_vm3, %v646_v62, 0.0 }
 0x300   :  { %520 = vadd.xlane.f32.xlu0 %v519_v63 }
 0x389   :  { %v521_v0 = vpop.xlane.xlu0 %520 }
 0x38a   :  { %647 = vrcp.f32 %v521_v0 }
 0x397   :  { %v648_v1 = vpop.eup %647 }
 0x398   :  { %v523_v2 = vmul.f32 %v648_v1, %v646_v62 }
 0x39a   :  { %524 = vst.msk [vmem:[#allocation2] sm:$0x3] %vm512_vm3, %v523_v2 }
 0x39b   :  { %660 = shalt.err (!%p657_p4)
}
 0x39c   :  { %534 = dma.vmem_to_hbm [thread:$0]  %s532_s9, 32, %s1016_s7, [#allocation3]  }
 0x39d   :  { %669 = dma.done.wait [#allocation3], 32  }
 0x39e   :  { %670 = vsyncadd [#allocation3], 4294967264 }
 0x39f   :  { %538 = vsyncpa [#allocation3], 1 }

</bundles_post_ra>
